<compile_context>
chip_gen: v5e
topology: v5e:2x2
jax: 0.10.0
libtpu: 0.0.40
codegen_flags: <defaults>
</compile_context>

<pallas_src>
import functools
import math

import jax
import jax.numpy as jnp
from jax import lax
from jax.experimental import pallas as pl
from jax.experimental.pallas import tpu as pltpu


# ---------------------------------------------------------------------------
# device / sizing helpers
# ---------------------------------------------------------------------------
def _device_kind():
    try:
        return jax.devices()[0].device_kind.lower()
    except Exception:
        return ""


def _is_v5e(kind):
    return ("v5 lite" in kind) or ("v5e" in kind) or ("v5lite" in kind)


def _row_tile_cap():
    kind = _device_kind()
    if "v6" in kind:
        return 1024          # 128 MiB VMEM: big tiles amortize the 9 MiB FFN weights
    if _is_v5e(kind):
        return 256           # 16 MiB default scoped VMEM
    return 512               # v7x (64 MiB physical) and default


def _vmem_cap():
    kind = _device_kind()
    if "v7" in kind or "7x" in kind:
        return 60 << 20      # v7x: 64 MiB physical VMEM per TensorCore
    return 100 << 20


def _row_tile(m):
    cap = _row_tile_cap()
    for tm in (1024, 512, 256, 128, 64, 32, 16, 8):
        if tm <= cap and m % tm == 0:
            return tm
    return m


def _batch_tile(b):
    for tb in (8, 4, 2, 1):
        if b % tb == 0:
            return tb
    return 1


def _padded_bytes(shape, dtype):
    # (8,128)-tile-padded VMEM footprint of ONE buffer of `shape`.
    s = list(shape)
    if len(s) >= 1:
        s[-1] = -(-s[-1] // 128) * 128
    if len(s) >= 2:
        s[-2] = -(-s[-2] // 8) * 8
    return math.prod(s) * jnp.dtype(dtype).itemsize


def _vmem_limit(byte_terms):
    total = sum(byte_terms)
    return int(min(_vmem_cap(), max(int(1.5 * total), 32 << 20)))


def _softmax_exp_dtype():
    # bf16 exp halves the single-EUP softmax cost on v6e/v7x; v5e's EUP has no
    # bf16 path, so keep f32 there.
    return jnp.float32 if _is_v5e(_device_kind()) else jnp.bfloat16


def _resident_spec(shape):
    # Weights / biases / LN params: constant index_map -> single buffer.
    return pl.BlockSpec(shape, lambda i, _n=len(shape): (0,) * _n,
                        pipeline_mode=pl.Buffered(1))


def _layernorm_f32(x, g, b, eps=1e-5):
    mu = jnp.mean(x, axis=-1, keepdims=True)
    var = jnp.mean((x - mu) * (x - mu), axis=-1, keepdims=True)
    return (x - mu) * jax.lax.rsqrt(var + eps) * g + b


# ---------------------------------------------------------------------------
# kernel 1: embedding LayerNorm (row-tiled, bf16 activation out)
# ---------------------------------------------------------------------------
def _ln_kernel(x_ref, g_ref, b_ref, o_ref):
    o_ref[...] = _layernorm_f32(x_ref[...], g_ref[...], b_ref[...]).astype(o_ref.dtype)


def layernorm(x, g, b, out_dtype=jnp.bfloat16):
    M, H = x.shape
    tm = _row_tile(M)
    row = pl.BlockSpec((tm, H), lambda i: (i, 0))
    return pl.pallas_call(
        _ln_kernel,
        out_shape=jax.ShapeDtypeStruct((M, H), out_dtype),
        grid=(M // tm,),
        in_specs=[row, _resident_spec((1, H)), _resident_spec((1, H))],
        out_specs=row,
        compiler_params=pltpu.CompilerParams(dimension_semantics=("parallel",)),
    )(x, g, b)


# ---------------------------------------------------------------------------
# kernel 2: fused attention block
#   QKV matmul -> per-head softmax attention (ctx into VMEM scratch)
#   -> Wo matmul -> residual -> LN1.  bf16 in/out, f32 math.
# ---------------------------------------------------------------------------
def _attn_block_kernel(x_ref, bias_ref, wqkv_ref, bqkv_ref, wo_ref, bo_ref,
                       g_ref, b_ref, o_ref, ctx_ref, *, nH, dH, scale, exp_dtype):
    H = nH * dH
    x = x_ref[0]                                              # (K, H) bf16
    K = x.shape[0]
    x_f32 = x.astype(jnp.float32)

    # fused Q|K|V projection: one (H, 3H) MXU matmul, bf16 operands, f32 acc
    qkv = jnp.dot(x, wqkv_ref[...], preferred_element_type=jnp.float32) + bqkv_ref[...]

    # hoist the additive-mask broadcast ONCE (JAX does not CSE broadcast_in_dim)
    bias_kk = jnp.broadcast_to(bias_ref[0], (K, K))           # (K, K) f32

    # heads = static lane slices of the VMEM tile; each head writes its column
    # slice of the persistent ctx scratch (no lane-axis concat relayout).
    for h in range(nH):
        # fold 1/sqrt(dH) into q: K*dH VPU muls instead of K*K score muls
        qh = (qkv[:, h * dH:(h + 1) * dH] * scale).astype(jnp.bfloat16)
        kh = qkv[:, H + h * dH:H + (h + 1) * dH].astype(jnp.bfloat16)
        vh = qkv[:, 2 * H + h * dH:2 * H + (h + 1) * dH].astype(jnp.bfloat16)
        # 'qd,kd->qk' (contract last dims; no explicit transpose)
        s = lax.dot_general(qh, kh, (((1,), (1,)), ((), ())),
                            preferred_element_type=jnp.float32) + bias_kk
        m = jnp.max(s, axis=-1, keepdims=True)
        p = jnp.exp((s - m).astype(exp_dtype))                # bf16 exp on v6e/v7x
        l = jnp.sum(p, axis=-1, keepdims=True, dtype=jnp.float32)
        o = jnp.dot(p.astype(jnp.bfloat16), vh, preferred_element_type=jnp.float32)
        # normalize AFTER the PV matmul: divides K*dH, not K*K, on the EUP
        ctx_ref[:, h * dH:(h + 1) * dH] = o * pl.reciprocal(l, approx=True)

    attn = jnp.dot(ctx_ref[...].astype(jnp.bfloat16), wo_ref[...],
                   preferred_element_type=jnp.float32) + bo_ref[...]
    o_ref[0] = _layernorm_f32(x_f32 + attn, g_ref[...], b_ref[...]).astype(o_ref.dtype)


def attn_block(x, attn_bias, lyr, nH):
    B, K, H = x.shape
    dH = H // nH
    scale = 1.0 / (dH ** 0.5)
    blk = pl.BlockSpec((1, K, H), lambda b: (b, 0, 0))
    bias_spec = pl.BlockSpec((1, 1, K), lambda b: (b, 0, 0))

    wbytes = (_padded_bytes(lyr["wqkv"].shape, lyr["wqkv"].dtype)
              + _padded_bytes(lyr["bqkv"].shape, jnp.float32)
              + _padded_bytes(lyr["wo"].shape, lyr["wo"].dtype)
              + _padded_bytes(lyr["bo"].shape, jnp.float32)
              + 2 * _padded_bytes((1, H), jnp.float32))
    vmem = _vmem_limit([
        2 * _padded_bytes((1, K, H), jnp.bfloat16),           # x (double-buffered)
        2 * _padded_bytes((1, 1, K), jnp.float32),            # mask bias
        wbytes,                                               # single-buffered weights
        2 * _padded_bytes((1, K, H), jnp.bfloat16),           # out
        _padded_bytes((K, H), jnp.float32),                   # ctx scratch
        _padded_bytes((K, 3 * H), jnp.float32),               # qkv temporary
        4 * _padded_bytes((K, K), jnp.float32),               # score/prob temporaries
    ])
    cost = pl.CostEstimate(
        flops=int(B * (2 * K * H * 3 * H + nH * 4 * K * K * dH + 2 * K * H * H)),
        transcendentals=int(B * nH * K * K),
        bytes_accessed=int(2 * B * K * H * 2 + B * K * 4
                           + H * 3 * H * 2 + H * H * 2 + 8 * H * 4),
    )
    # TODO(synk): v7x extra win: add a q-tile grid axis (grid=(B, K//Tq)).
    return pl.pallas_call(
        functools.partial(_attn_block_kernel, nH=nH, dH=dH, scale=scale,
                          exp_dtype=_softmax_exp_dtype()),
        out_shape=jax.ShapeDtypeStruct((B, K, H), jnp.bfloat16),
        grid=(B,),
        in_specs=[blk, bias_spec,
                  _resident_spec(lyr["wqkv"].shape), _resident_spec(lyr["bqkv"].shape),
                  _resident_spec(lyr["wo"].shape), _resident_spec(lyr["bo"].shape),
                  _resident_spec(lyr["ln1_g"].shape), _resident_spec(lyr["ln1_b"].shape)],
        out_specs=blk,
        scratch_shapes=[pltpu.VMEM((K, H), jnp.float32)],
        compiler_params=pltpu.CompilerParams(
            dimension_semantics=("parallel",), vmem_limit_bytes=vmem),
        cost_estimate=cost,
    )(x, attn_bias, lyr["wqkv"], lyr["bqkv"], lyr["wo"], lyr["bo"],
      lyr["ln1_g"], lyr["ln1_b"])


# ---------------------------------------------------------------------------
# kernel 3: fused FFN block  (w1 + GELU + w2 + residual + LN2), row-tiled
# ---------------------------------------------------------------------------
def _ffn_block_kernel(x_ref, w1_ref, b1_ref, w2_ref, b2_ref, g_ref, b_ref, o_ref):
    x = x_ref[...]                                            # (tm, H) bf16
    h = jnp.dot(x, w1_ref[...], preferred_element_type=jnp.float32) + b1_ref[...]
    # TODO(synk): tanh-approx GELU; PyTorch nn.GELU default is exact erf.
    h = 0.5 * h * (1.0 + jnp.tanh(0.7978845608028654 * (h + 0.044715 * h * h * h)))
    y = jnp.dot(h.astype(jnp.bfloat16), w2_ref[...],
                preferred_element_type=jnp.float32) + b2_ref[...]
    o_ref[...] = _layernorm_f32(x.astype(jnp.float32) + y,
                                g_ref[...], b_ref[...]).astype(o_ref.dtype)


def ffn_block(x, lyr):
    M, H = x.shape
    FFN = lyr["w1"].shape[1]
    tm = _row_tile(M)
    row = pl.BlockSpec((tm, H), lambda i: (i, 0))
    vmem = _vmem_limit([
        2 * _padded_bytes((tm, H), jnp.bfloat16),             # x
        _padded_bytes(lyr["w1"].shape, jnp.bfloat16),
        _padded_bytes(lyr["b1"].shape, jnp.float32),
        _padded_bytes(lyr["w2"].shape, jnp.bfloat16),
        _padded_bytes(lyr["b2"].shape, jnp.float32),
        2 * _padded_bytes((1, H), jnp.float32),
        2 * _padded_bytes((tm, H), jnp.bfloat16),             # out
        2 * _padded_bytes((tm, FFN), jnp.float32),            # GELU temporaries
    ])
    cost = pl.CostEstimate(
        flops=int(4 * M * H * FFN),
        transcendentals=int(M * FFN),
        bytes_accessed=int(2 * M * H * 2 + 2 * H * FFN * 2 + (FFN + 3 * H) * 4),
    )
    return pl.pallas_call(
        _ffn_block_kernel,
        out_shape=jax.ShapeDtypeStruct((M, H), jnp.bfloat16),
        grid=(M // tm,),
        in_specs=[row,
                  _resident_spec(lyr["w1"].shape), _resident_spec(lyr["b1"].shape),
                  _resident_spec(lyr["w2"].shape), _resident_spec(lyr["b2"].shape),
                  _resident_spec(lyr["ln2_g"].shape), _resident_spec(lyr["ln2_b"].shape)],
        out_specs=row,
        compiler_params=pltpu.CompilerParams(
            dimension_semantics=("parallel",), vmem_limit_bytes=vmem),
        cost_estimate=cost,
    )(x, lyr["w1"], lyr["b1"], lyr["w2"], lyr["b2"], lyr["ln2_g"], lyr["ln2_b"])


# ---------------------------------------------------------------------------
# kernel 4: fused mean-pool (AdaptiveAvgPool1d(1)) + 4-layer classifier MLP,
#   batch-tiled ("parallel") so the hidden state never sits in VMEM whole.
#   Output is a lane-dense 128-wide slab; sliced to C in the wrapper.
# ---------------------------------------------------------------------------
def _pool_cls_kernel(h_ref, w0_ref, b0_ref, w1_ref, b1_ref,
                     w2_ref, b2_ref, w3_ref, b3_ref, o_ref):
    # AdaptiveAvgPool1d(1) over the sequence axis == mean over all K positions
    pooled = jnp.mean(h_ref[...].astype(jnp.float32), axis=1)      # (tb, H)
    z = jnp.tanh(jnp.dot(pooled.astype(jnp.bfloat16), w0_ref[...],
                         preferred_element_type=jnp.float32) + b0_ref[...])
    z = jnp.tanh(jnp.dot(z.astype(jnp.bfloat16), w1_ref[...],
                         preferred_element_type=jnp.float32) + b1_ref[...])
    z = jnp.tanh(jnp.dot(z.astype(jnp.bfloat16), w2_ref[...],
                         preferred_element_type=jnp.float32) + b2_ref[...])
    o_ref[...] = jnp.dot(z.astype(jnp.bfloat16), w3_ref[...],
                         preferred_element_type=jnp.float32) + b3_ref[...]


def pool_classifier(h, cls):
    B, K, H = h.shape
    Cp = cls["w3"].shape[1]
    tb = _batch_tile(B)
    blk = pl.BlockSpec((tb, K, H), lambda i: (i, 0, 0))
    out_blk = pl.BlockSpec((tb, Cp), lambda i: (i, 0))

    args, in_specs, wbytes = [h], [blk], []
    for wn, bn in (("w0", "b0"), ("w1", "b1"), ("w2", "b2"), ("w3", "b3")):
        args += [cls[wn], cls[bn]]
        in_specs += [_resident_spec(cls[wn].shape), _resident_spec(cls[bn].shape)]
        wbytes += [_padded_bytes(cls[wn].shape, cls[wn].dtype),
                   _padded_bytes(cls[bn].shape, jnp.float32)]
    vmem = _vmem_limit([2 * _padded_bytes((tb, K, H), jnp.bfloat16),
                        2 * _padded_bytes((tb, Cp), jnp.float32),
                        2 * _padded_bytes((tb, H), jnp.float32)] + wbytes)
    return pl.pallas_call(
        _pool_cls_kernel,
        out_shape=jax.ShapeDtypeStruct((B, Cp), jnp.float32),
        grid=(B // tb,),
        in_specs=in_specs,
        out_specs=out_blk,
        compiler_params=pltpu.CompilerParams(
            dimension_semantics=("parallel",), vmem_limit_bytes=vmem),
    )(*args)


# ---------------------------------------------------------------------------
# parameter init (deterministic, synthetic; matmul weights stored bf16)
# ---------------------------------------------------------------------------
def init_params(key, cfg):
    H, H1, H2, C = cfg["H"], cfg["H1"], cfg["H2"], cfg["C"]
    FFN, Cp = cfg["FFN"], cfg["C_pad"]

    def nxt():
        nonlocal key
        key, sub = jax.random.split(key)
        return sub

    def w(shape, dtype=jnp.bfloat16):
        return (jax.random.normal(nxt(), shape, jnp.float32) * 0.02).astype(dtype)

    params = {
        "word_emb": w((cfg["vocab"], H), jnp.float32),
        "pos_emb": w((cfg["max_pos"], H), jnp.float32),
        "type_emb": w((1, H), jnp.float32),
        "emb_ln_g": jnp.ones((1, H), jnp.float32),
        "emb_ln_b": jnp.zeros((1, H), jnp.float32),
        "layers": [],
    }
    for _ in range(cfg["layers"]):
        params["layers"].append({
            # fused QKV projection: wq|wk|wv concatenated along the output dim
            "wqkv": w((H, 3 * H)), "bqkv": jnp.zeros((1, 3 * H), jnp.float32),
            "wo": w((H, H)), "bo": jnp.zeros((1, H), jnp.float32),
            "ln1_g": jnp.ones((1, H), jnp.float32),
            "ln1_b": jnp.zeros((1, H), jnp.float32),
            "w1": w((H, FFN)), "b1": jnp.zeros((1, FFN), jnp.float32),
            "w2": w((FFN, H)), "b2": jnp.zeros((1, H), jnp.float32),
            "ln2_g": jnp.ones((1, H), jnp.float32),
            "ln2_b": jnp.zeros((1, H), jnp.float32),
        })
    # final classifier layer padded to a lane-dense Cp-wide output
    w3 = jnp.zeros((H2, Cp), jnp.float32)
    w3 = w3.at[:, :C].set(jax.random.normal(nxt(), (H2, C), jnp.float32) * 0.02)
    params["cls"] = {
        "w0": w((H, H)),   "b0": jnp.zeros((1, H), jnp.float32),
        "w1": w((H, H1)),  "b1": jnp.zeros((1, H1), jnp.float32),
        "w2": w((H1, H2)), "b2": jnp.zeros((1, H2), jnp.float32),
        "w3": w3.astype(jnp.bfloat16), "b3": jnp.zeros((1, Cp), jnp.float32),
    }
    return params


# ---------------------------------------------------------------------------
# forward pass (mirrors RobertaClassifierModule.forward)
# ---------------------------------------------------------------------------
def roberta_classifier_forward(params, indices, mask, cfg):
    B, K = indices.shape
    H, nH = cfg["H"], cfg["nH"]
    pad_id = cfg["pad_id"]

    # ---- embeddings (gather is JAX glue; LayerNorm is a Pallas kernel) ----
    ne = (indices != pad_id).astype(jnp.int32)
    pos_ids = jnp.cumsum(ne, axis=1) * ne + pad_id            # RoBERTa position ids
    pos_ids = jnp.minimum(pos_ids, cfg["max_pos"] - 1)        # guard OOB gather
    emb = (jnp.take(params["word_emb"], indices, axis=0)
           + jnp.take(params["pos_emb"], pos_ids, axis=0)
           + params["type_emb"][0][None, None, :])
    h = layernorm(emb.reshape(B * K, H),
                  params["emb_ln_g"], params["emb_ln_b"]).reshape(B, K, H)
    # TODO(synk): train-mode dropout omitted (deterministic kernel).

    # additive attention-mask bias (B, 1, K); broadcast over heads in-kernel
    attn_bias = ((1.0 - mask.astype(jnp.float32)) * -1e9)[:, None, :]

    # ---- transformer encoder layers: 2 fused Pallas calls per layer ----
    for lyr in params["layers"]:
        h = attn_block(h, attn_bias, lyr, nH)                 # (B, K, H) bf16
        h = ffn_block(h.reshape(B * K, H), lyr).reshape(B, K, H)

    # ---- fused mean-pool (over all K positions, as AdaptiveAvgPool1d does)
    #      + classifier MLP; slice padded logits ----
    logits_padded = pool_classifier(h, params["cls"])         # (B, C_pad) f32
    return logits_padded[:, :cfg["C"]]


# ---------------------------------------------------------------------------
if __name__ == "__main__":
    cfg = dict(vocab=64, max_pos=40, H=32, nH=4, FFN=64, layers=2,
               H1=16, H2=16, C=3, C_pad=128, pad_id=1)
    B, K = 2, 8

    key = jax.random.PRNGKey(0)
    k_param, k_idx = jax.random.split(key)

    params = init_params(k_param, cfg)

    indices = jax.random.randint(k_idx, (B, K), 2, cfg["vocab"], dtype=jnp.int32)
    mask = jnp.ones((B, K), dtype=jnp.int32)
    mask = mask.at[1, 6:].set(0)                 # second example is padded
    indices = jnp.where(mask == 1, indices, cfg["pad_id"])

    fwd = jax.jit(functools.partial(roberta_classifier_forward, cfg=cfg))
    logits = fwd(params, indices, mask)
    logits = jax.block_until_ready(logits)

    assert logits.shape == (B, cfg["C"])
    assert logits.dtype == jnp.float32
    assert bool(jnp.all(jnp.isfinite(logits)))
    print("KERNEL_OK")
</pallas_src>

<mosaic_0001>
module attributes {stable_mosaic.version = 11 : i64} {
  func.func @_attn_block_kernel(%arg0: i32, %arg1: memref<1x8x32xbf16, #tpu.memory_space<vmem>>, %arg2: memref<1x1x8xf32, #tpu.memory_space<vmem>>, %arg3: memref<32x96xbf16, #tpu.memory_space<vmem>>, %arg4: memref<1x96xf32, #tpu.memory_space<vmem>>, %arg5: memref<32x32xbf16, #tpu.memory_space<vmem>>, %arg6: memref<1x32xf32, #tpu.memory_space<vmem>>, %arg7: memref<1x32xf32, #tpu.memory_space<vmem>>, %arg8: memref<1x32xf32, #tpu.memory_space<vmem>>, %arg9: memref<1x8x32xbf16, #tpu.memory_space<vmem>>, %arg10: memref<8x32xf32, #tpu.memory_space<vmem>>) attributes {dimension_semantics = [#tpu.dimension_semantics<parallel>], iteration_bounds = array<i64: 2>, scalar_prefetch = 0 : i64, scratch_operands = 1 : i64, tpu.core_type = #tpu.core_type<tc>, window_params = [{transform_indices = @transform_0, window_bounds = array<i64: 1, 8, 32>}, {transform_indices = @transform_1, window_bounds = array<i64: 1, 1, 8>}, {pipeline_mode = #tpu.pipeline_mode<synchronous>, transform_indices = @transform_2, window_bounds = array<i64: 32, 96>}, {pipeline_mode = #tpu.pipeline_mode<synchronous>, transform_indices = @transform_3, window_bounds = array<i64: 1, 96>}, {pipeline_mode = #tpu.pipeline_mode<synchronous>, transform_indices = @transform_4, window_bounds = array<i64: 32, 32>}, {pipeline_mode = #tpu.pipeline_mode<synchronous>, transform_indices = @transform_5, window_bounds = array<i64: 1, 32>}, {pipeline_mode = #tpu.pipeline_mode<synchronous>, transform_indices = @transform_6, window_bounds = array<i64: 1, 32>}, {pipeline_mode = #tpu.pipeline_mode<synchronous>, transform_indices = @transform_7, window_bounds = array<i64: 1, 32>}, {transform_indices = @transform_8, window_bounds = array<i64: 1, 8, 32>}]} {
    %c0 = arith.constant 0 : index
    %c0_0 = arith.constant 0 : index
    %c0_1 = arith.constant 0 : index
    %0 = vector.load %arg1[%c0, %c0_0, %c0_1] : memref<1x8x32xbf16, #tpu.memory_space<vmem>>, vector<1x8x32xbf16>
    %1 = vector.shape_cast %0 : vector<1x8x32xbf16> to vector<8x32xbf16>
    %2 = arith.extf %1 : vector<8x32xbf16> to vector<8x32xf32>
    %c0_2 = arith.constant 0 : index
    %c0_3 = arith.constant 0 : index
    %3 = vector.load %arg3[%c0_2, %c0_3] : memref<32x96xbf16, #tpu.memory_space<vmem>>, vector<32x96xbf16>
    %cst = arith.constant dense<0.000000e+00> : vector<8x96xf32>
    %4 = tpu.matmul %1, %3, %cst {dimension_numbers = #tpu.dot_dimension_numbers<[1], [0], [0], [1], [0, 0, 1, 1], [], []>} : vector<8x32xbf16>, vector<32x96xbf16>, vector<8x96xf32> -> vector<8x96xf32>
    %c0_4 = arith.constant 0 : index
    %c0_5 = arith.constant 0 : index
    %5 = vector.load %arg4[%c0_4, %c0_5] : memref<1x96xf32, #tpu.memory_space<vmem>>, vector<1x96xf32>
    %6 = vector.broadcast %5 : vector<1x96xf32> to vector<8x96xf32>
    %7 = arith.addf %4, %6 : vector<8x96xf32>
    %c0_6 = arith.constant 0 : index
    %c0_7 = arith.constant 0 : index
    %c0_8 = arith.constant 0 : index
    %8 = vector.load %arg2[%c0_6, %c0_7, %c0_8] : memref<1x1x8xf32, #tpu.memory_space<vmem>>, vector<1x1x8xf32>
    %9 = vector.shape_cast %8 : vector<1x1x8xf32> to vector<1x8xf32>
    %10 = vector.shape_cast %9 : vector<1x8xf32> to vector<1x8xf32>
    %11 = vector.broadcast %10 : vector<1x8xf32> to vector<8x8xf32>
    %12 = vector.extract_strided_slice %7 {offsets = [0, 0], sizes = [8, 8], strides = [1, 1]} : vector<8x96xf32> to vector<8x8xf32>
    %cst_9 = arith.constant 0.353553385 : f32
    %13 = vector.broadcast %cst_9 : f32 to vector<8x8xf32>
    %14 = arith.mulf %12, %13 : vector<8x8xf32>
    %15 = arith.truncf %14 : vector<8x8xf32> to vector<8x8xbf16>
    %16 = vector.extract_strided_slice %7 {offsets = [0, 32], sizes = [8, 8], strides = [1, 1]} : vector<8x96xf32> to vector<8x8xf32>
    %17 = arith.truncf %16 : vector<8x8xf32> to vector<8x8xbf16>
    %18 = vector.extract_strided_slice %7 {offsets = [0, 64], sizes = [8, 8], strides = [1, 1]} : vector<8x96xf32> to vector<8x8xf32>
    %19 = arith.truncf %18 : vector<8x8xf32> to vector<8x8xbf16>
    %cst_10 = arith.constant dense<0.000000e+00> : vector<8x8xf32>
    %20 = tpu.matmul %15, %17, %cst_10 {dimension_numbers = #tpu.dot_dimension_numbers<[1], [1], [0], [0], [0, 0, 1, 0], [], []>} : vector<8x8xbf16>, vector<8x8xbf16>, vector<8x8xf32> -> vector<8x8xf32>
    %21 = arith.addf %20, %11 : vector<8x8xf32>
    %cst_11 = arith.constant dense<0xFF800000> : vector<8xf32>
    %22 = vector.multi_reduction <maximumf>, %21, %cst_11 [1] : vector<8x8xf32> to vector<8xf32>
    %23 = vector.shape_cast %22 : vector<8xf32> to vector<8x1xf32>
    %24 = vector.broadcast %23 : vector<8x1xf32> to vector<8x8xf32>
    %25 = arith.subf %21, %24 : vector<8x8xf32>
    %26 = arith.truncf %25 : vector<8x8xf32> to vector<8x8xbf16>
    %27 = math.exp %26 : vector<8x8xbf16>
    %28 = arith.extf %27 : vector<8x8xbf16> to vector<8x8xf32>
    %cst_12 = arith.constant dense<0.000000e+00> : vector<8xf32>
    %29 = vector.multi_reduction <add>, %28, %cst_12 [1] : vector<8x8xf32> to vector<8xf32>
    %30 = vector.shape_cast %29 : vector<8xf32> to vector<8x1xf32>
    %cst_13 = arith.constant dense<0.000000e+00> : vector<8x8xf32>
    %31 = tpu.matmul %27, %19, %cst_13 {dimension_numbers = #tpu.dot_dimension_numbers<[1], [0], [0], [1], [0, 0, 1, 1], [], []>} : vector<8x8xbf16>, vector<8x8xbf16>, vector<8x8xf32> -> vector<8x8xf32>
    %32 = tpu.reciprocal %30 {approx = true} : vector<8x1xf32> -> vector<8x1xf32>
    %33 = vector.broadcast %32 : vector<8x1xf32> to vector<8x8xf32>
    %34 = arith.mulf %31, %33 : vector<8x8xf32>
    %c0_14 = arith.constant 0 : index
    %c0_15 = arith.constant 0 : index
    %35 = vector.load %arg10[%c0_14, %c0_15] : memref<8x32xf32, #tpu.memory_space<vmem>>, vector<8x8xf32>
    tpu.vector_store %arg10[%c0_14, %c0_15], %34 {strides = array<i32>} : memref<8x32xf32, #tpu.memory_space<vmem>>, vector<8x8xf32>,
    %36 = vector.extract_strided_slice %7 {offsets = [0, 8], sizes = [8, 8], strides = [1, 1]} : vector<8x96xf32> to vector<8x8xf32>
    %cst_16 = arith.constant 0.353553385 : f32
    %37 = vector.broadcast %cst_16 : f32 to vector<8x8xf32>
    %38 = arith.mulf %36, %37 : vector<8x8xf32>
    %39 = arith.truncf %38 : vector<8x8xf32> to vector<8x8xbf16>
    %40 = vector.extract_strided_slice %7 {offsets = [0, 40], sizes = [8, 8], strides = [1, 1]} : vector<8x96xf32> to vector<8x8xf32>
    %41 = arith.truncf %40 : vector<8x8xf32> to vector<8x8xbf16>
    %42 = vector.extract_strided_slice %7 {offsets = [0, 72], sizes = [8, 8], strides = [1, 1]} : vector<8x96xf32> to vector<8x8xf32>
    %43 = arith.truncf %42 : vector<8x8xf32> to vector<8x8xbf16>
    %cst_17 = arith.constant dense<0.000000e+00> : vector<8x8xf32>
    %44 = tpu.matmul %39, %41, %cst_17 {dimension_numbers = #tpu.dot_dimension_numbers<[1], [1], [0], [0], [0, 0, 1, 0], [], []>} : vector<8x8xbf16>, vector<8x8xbf16>, vector<8x8xf32> -> vector<8x8xf32>
    %45 = arith.addf %44, %11 : vector<8x8xf32>
    %cst_18 = arith.constant dense<0xFF800000> : vector<8xf32>
    %46 = vector.multi_reduction <maximumf>, %45, %cst_18 [1] : vector<8x8xf32> to vector<8xf32>
    %47 = vector.shape_cast %46 : vector<8xf32> to vector<8x1xf32>
    %48 = vector.broadcast %47 : vector<8x1xf32> to vector<8x8xf32>
    %49 = arith.subf %45, %48 : vector<8x8xf32>
    %50 = arith.truncf %49 : vector<8x8xf32> to vector<8x8xbf16>
    %51 = math.exp %50 : vector<8x8xbf16>
    %52 = arith.extf %51 : vector<8x8xbf16> to vector<8x8xf32>
    %cst_19 = arith.constant dense<0.000000e+00> : vector<8xf32>
    %53 = vector.multi_reduction <add>, %52, %cst_19 [1] : vector<8x8xf32> to vector<8xf32>
    %54 = vector.shape_cast %53 : vector<8xf32> to vector<8x1xf32>
    %cst_20 = arith.constant dense<0.000000e+00> : vector<8x8xf32>
    %55 = tpu.matmul %51, %43, %cst_20 {dimension_numbers = #tpu.dot_dimension_numbers<[1], [0], [0], [1], [0, 0, 1, 1], [], []>} : vector<8x8xbf16>, vector<8x8xbf16>, vector<8x8xf32> -> vector<8x8xf32>
    %56 = tpu.reciprocal %54 {approx = true} : vector<8x1xf32> -> vector<8x1xf32>
    %57 = vector.broadcast %56 : vector<8x1xf32> to vector<8x8xf32>
    %58 = arith.mulf %55, %57 : vector<8x8xf32>
    %c0_21 = arith.constant 0 : index
    %c8 = arith.constant 8 : index
    %59 = vector.load %arg10[%c0_21, %c8] : memref<8x32xf32, #tpu.memory_space<vmem>>, vector<8x8xf32>
    tpu.vector_store %arg10[%c0_21, %c8], %58 {strides = array<i32>} : memref<8x32xf32, #tpu.memory_space<vmem>>, vector<8x8xf32>,
    %60 = vector.extract_strided_slice %7 {offsets = [0, 16], sizes = [8, 8], strides = [1, 1]} : vector<8x96xf32> to vector<8x8xf32>
    %cst_22 = arith.constant 0.353553385 : f32
    %61 = vector.broadcast %cst_22 : f32 to vector<8x8xf32>
    %62 = arith.mulf %60, %61 : vector<8x8xf32>
    %63 = arith.truncf %62 : vector<8x8xf32> to vector<8x8xbf16>
    %64 = vector.extract_strided_slice %7 {offsets = [0, 48], sizes = [8, 8], strides = [1, 1]} : vector<8x96xf32> to vector<8x8xf32>
    %65 = arith.truncf %64 : vector<8x8xf32> to vector<8x8xbf16>
    %66 = vector.extract_strided_slice %7 {offsets = [0, 80], sizes = [8, 8], strides = [1, 1]} : vector<8x96xf32> to vector<8x8xf32>
    %67 = arith.truncf %66 : vector<8x8xf32> to vector<8x8xbf16>
    %cst_23 = arith.constant dense<0.000000e+00> : vector<8x8xf32>
    %68 = tpu.matmul %63, %65, %cst_23 {dimension_numbers = #tpu.dot_dimension_numbers<[1], [1], [0], [0], [0, 0, 1, 0], [], []>} : vector<8x8xbf16>, vector<8x8xbf16>, vector<8x8xf32> -> vector<8x8xf32>
    %69 = arith.addf %68, %11 : vector<8x8xf32>
    %cst_24 = arith.constant dense<0xFF800000> : vector<8xf32>
    %70 = vector.multi_reduction <maximumf>, %69, %cst_24 [1] : vector<8x8xf32> to vector<8xf32>
    %71 = vector.shape_cast %70 : vector<8xf32> to vector<8x1xf32>
    %72 = vector.broadcast %71 : vector<8x1xf32> to vector<8x8xf32>
    %73 = arith.subf %69, %72 : vector<8x8xf32>
    %74 = arith.truncf %73 : vector<8x8xf32> to vector<8x8xbf16>
    %75 = math.exp %74 : vector<8x8xbf16>
    %76 = arith.extf %75 : vector<8x8xbf16> to vector<8x8xf32>
    %cst_25 = arith.constant dense<0.000000e+00> : vector<8xf32>
    %77 = vector.multi_reduction <add>, %76, %cst_25 [1] : vector<8x8xf32> to vector<8xf32>
    %78 = vector.shape_cast %77 : vector<8xf32> to vector<8x1xf32>
    %cst_26 = arith.constant dense<0.000000e+00> : vector<8x8xf32>
    %79 = tpu.matmul %75, %67, %cst_26 {dimension_numbers = #tpu.dot_dimension_numbers<[1], [0], [0], [1], [0, 0, 1, 1], [], []>} : vector<8x8xbf16>, vector<8x8xbf16>, vector<8x8xf32> -> vector<8x8xf32>
    %80 = tpu.reciprocal %78 {approx = true} : vector<8x1xf32> -> vector<8x1xf32>
    %81 = vector.broadcast %80 : vector<8x1xf32> to vector<8x8xf32>
    %82 = arith.mulf %79, %81 : vector<8x8xf32>
    %c0_27 = arith.constant 0 : index
    %c16 = arith.constant 16 : index
    %83 = vector.load %arg10[%c0_27, %c16] : memref<8x32xf32, #tpu.memory_space<vmem>>, vector<8x8xf32>
    tpu.vector_store %arg10[%c0_27, %c16], %82 {strides = array<i32>} : memref<8x32xf32, #tpu.memory_space<vmem>>, vector<8x8xf32>,
    %84 = vector.extract_strided_slice %7 {offsets = [0, 24], sizes = [8, 8], strides = [1, 1]} : vector<8x96xf32> to vector<8x8xf32>
    %cst_28 = arith.constant 0.353553385 : f32
    %85 = vector.broadcast %cst_28 : f32 to vector<8x8xf32>
    %86 = arith.mulf %84, %85 : vector<8x8xf32>
    %87 = arith.truncf %86 : vector<8x8xf32> to vector<8x8xbf16>
    %88 = vector.extract_strided_slice %7 {offsets = [0, 56], sizes = [8, 8], strides = [1, 1]} : vector<8x96xf32> to vector<8x8xf32>
    %89 = arith.truncf %88 : vector<8x8xf32> to vector<8x8xbf16>
    %90 = vector.extract_strided_slice %7 {offsets = [0, 88], sizes = [8, 8], strides = [1, 1]} : vector<8x96xf32> to vector<8x8xf32>
    %91 = arith.truncf %90 : vector<8x8xf32> to vector<8x8xbf16>
    %cst_29 = arith.constant dense<0.000000e+00> : vector<8x8xf32>
    %92 = tpu.matmul %87, %89, %cst_29 {dimension_numbers = #tpu.dot_dimension_numbers<[1], [1], [0], [0], [0, 0, 1, 0], [], []>} : vector<8x8xbf16>, vector<8x8xbf16>, vector<8x8xf32> -> vector<8x8xf32>
    %93 = arith.addf %92, %11 : vector<8x8xf32>
    %cst_30 = arith.constant dense<0xFF800000> : vector<8xf32>
    %94 = vector.multi_reduction <maximumf>, %93, %cst_30 [1] : vector<8x8xf32> to vector<8xf32>
    %95 = vector.shape_cast %94 : vector<8xf32> to vector<8x1xf32>
    %96 = vector.broadcast %95 : vector<8x1xf32> to vector<8x8xf32>
    %97 = arith.subf %93, %96 : vector<8x8xf32>
    %98 = arith.truncf %97 : vector<8x8xf32> to vector<8x8xbf16>
    %99 = math.exp %98 : vector<8x8xbf16>
    %100 = arith.extf %99 : vector<8x8xbf16> to vector<8x8xf32>
    %cst_31 = arith.constant dense<0.000000e+00> : vector<8xf32>
    %101 = vector.multi_reduction <add>, %100, %cst_31 [1] : vector<8x8xf32> to vector<8xf32>
    %102 = vector.shape_cast %101 : vector<8xf32> to vector<8x1xf32>
    %cst_32 = arith.constant dense<0.000000e+00> : vector<8x8xf32>
    %103 = tpu.matmul %99, %91, %cst_32 {dimension_numbers = #tpu.dot_dimension_numbers<[1], [0], [0], [1], [0, 0, 1, 1], [], []>} : vector<8x8xbf16>, vector<8x8xbf16>, vector<8x8xf32> -> vector<8x8xf32>
    %104 = tpu.reciprocal %102 {approx = true} : vector<8x1xf32> -> vector<8x1xf32>
    %105 = vector.broadcast %104 : vector<8x1xf32> to vector<8x8xf32>
    %106 = arith.mulf %103, %105 : vector<8x8xf32>
    %c0_33 = arith.constant 0 : index
    %c24 = arith.constant 24 : index
    %107 = vector.load %arg10[%c0_33, %c24] : memref<8x32xf32, #tpu.memory_space<vmem>>, vector<8x8xf32>
    tpu.vector_store %arg10[%c0_33, %c24], %106 {strides = array<i32>} : memref<8x32xf32, #tpu.memory_space<vmem>>, vector<8x8xf32>,
    %c0_34 = arith.constant 0 : index
    %c0_35 = arith.constant 0 : index
    %108 = vector.load %arg10[%c0_34, %c0_35] : memref<8x32xf32, #tpu.memory_space<vmem>>, vector<8x32xf32>
    %109 = arith.truncf %108 : vector<8x32xf32> to vector<8x32xbf16>
    %c0_36 = arith.constant 0 : index
    %c0_37 = arith.constant 0 : index
    %110 = vector.load %arg5[%c0_36, %c0_37] : memref<32x32xbf16, #tpu.memory_space<vmem>>, vector<32x32xbf16>
    %cst_38 = arith.constant dense<0.000000e+00> : vector<8x32xf32>
    %111 = tpu.matmul %109, %110, %cst_38 {dimension_numbers = #tpu.dot_dimension_numbers<[1], [0], [0], [1], [0, 0, 1, 1], [], []>} : vector<8x32xbf16>, vector<32x32xbf16>, vector<8x32xf32> -> vector<8x32xf32>
    %c0_39 = arith.constant 0 : index
    %c0_40 = arith.constant 0 : index
    %112 = vector.load %arg6[%c0_39, %c0_40] : memref<1x32xf32, #tpu.memory_space<vmem>>, vector<1x32xf32>
    %113 = vector.broadcast %112 : vector<1x32xf32> to vector<8x32xf32>
    %114 = arith.addf %111, %113 : vector<8x32xf32>
    %115 = arith.addf %2, %114 : vector<8x32xf32>
    %c0_41 = arith.constant 0 : index
    %c0_42 = arith.constant 0 : index
    %116 = vector.load %arg7[%c0_41, %c0_42] : memref<1x32xf32, #tpu.memory_space<vmem>>, vector<1x32xf32>
    %c0_43 = arith.constant 0 : index
    %c0_44 = arith.constant 0 : index
    %117 = vector.load %arg8[%c0_43, %c0_44] : memref<1x32xf32, #tpu.memory_space<vmem>>, vector<1x32xf32>
    %cst_45 = arith.constant dense<0.000000e+00> : vector<8xf32>
    %118 = vector.multi_reduction <add>, %115, %cst_45 [1] : vector<8x32xf32> to vector<8xf32>
    %119 = vector.shape_cast %118 : vector<8xf32> to vector<8x1xf32>
    %cst_46 = arith.constant 3.200000e+01 : f32
    %120 = vector.broadcast %cst_46 : f32 to vector<8x1xf32>
    %121 = arith.divf %119, %120 : vector<8x1xf32>
    %122 = vector.broadcast %121 : vector<8x1xf32> to vector<8x32xf32>
    %123 = arith.subf %115, %122 : vector<8x32xf32>
    %124 = vector.broadcast %121 : vector<8x1xf32> to vector<8x32xf32>
    %125 = arith.subf %115, %124 : vector<8x32xf32>
    %126 = arith.mulf %123, %125 : vector<8x32xf32>
    %cst_47 = arith.constant dense<0.000000e+00> : vector<8xf32>
    %127 = vector.multi_reduction <add>, %126, %cst_47 [1] : vector<8x32xf32> to vector<8xf32>
    %128 = vector.shape_cast %127 : vector<8xf32> to vector<8x1xf32>
    %cst_48 = arith.constant 3.200000e+01 : f32
    %129 = vector.broadcast %cst_48 : f32 to vector<8x1xf32>
    %130 = arith.divf %128, %129 : vector<8x1xf32>
    %131 = vector.broadcast %121 : vector<8x1xf32> to vector<8x32xf32>
    %132 = arith.subf %115, %131 : vector<8x32xf32>
    %cst_49 = arith.constant 9.99999974E-6 : f32
    %133 = vector.broadcast %cst_49 : f32 to vector<8x1xf32>
    %134 = arith.addf %130, %133 : vector<8x1xf32>
    %135 = math.rsqrt %134 : vector<8x1xf32>
    %136 = vector.broadcast %135 : vector<8x1xf32> to vector<8x32xf32>
    %137 = arith.mulf %132, %136 : vector<8x32xf32>
    %138 = vector.broadcast %116 : vector<1x32xf32> to vector<8x32xf32>
    %139 = arith.mulf %137, %138 : vector<8x32xf32>
    %140 = vector.broadcast %117 : vector<1x32xf32> to vector<8x32xf32>
    %141 = arith.addf %139, %140 : vector<8x32xf32>
    %142 = arith.truncf %141 : vector<8x32xf32> to vector<8x32xbf16>
    %c0_50 = arith.constant 0 : index
    %c0_51 = arith.constant 0 : index
    %c0_52 = arith.constant 0 : index
    %143 = vector.load %arg9[%c0_50, %c0_51, %c0_52] : memref<1x8x32xbf16, #tpu.memory_space<vmem>>, vector<1x8x32xbf16>
    %144 = vector.shape_cast %143 : vector<1x8x32xbf16> to vector<8x32xbf16>
    %145 = vector.shape_cast %142 : vector<8x32xbf16> to vector<1x8x32xbf16>
    tpu.vector_store %arg9[%c0_50, %c0_51, %c0_52], %145 {strides = array<i32>} : memref<1x8x32xbf16, #tpu.memory_space<vmem>>, vector<1x8x32xbf16>,
    return
  }
  func.func @transform_0(%arg0: i32) -> (i32, i32, i32) {
    %c0_i32 = arith.constant 0 : i32
    %c0_i32_0 = arith.constant 0 : i32
    %c0_i32_1 = arith.constant 0 : i32
    return %arg0, %c0_i32, %c0_i32_0 : i32, i32, i32
  }
  func.func @transform_1(%arg0: i32) -> (i32, i32, i32) {
    %c0_i32 = arith.constant 0 : i32
    %c0_i32_0 = arith.constant 0 : i32
    %c0_i32_1 = arith.constant 0 : i32
    return %arg0, %c0_i32, %c0_i32_0 : i32, i32, i32
  }
  func.func @transform_2(%arg0: i32) -> (i32, i32) {
    %c0_i32 = arith.constant 0 : i32
    %c0_i32_0 = arith.constant 0 : i32
    %c0_i32_1 = arith.constant 0 : i32
    return %c0_i32, %c0_i32_0 : i32, i32
  }
  func.func @transform_3(%arg0: i32) -> (i32, i32) {
    %c0_i32 = arith.constant 0 : i32
    %c0_i32_0 = arith.constant 0 : i32
    %c0_i32_1 = arith.constant 0 : i32
    return %c0_i32, %c0_i32_0 : i32, i32
  }
  func.func @transform_4(%arg0: i32) -> (i32, i32) {
    %c0_i32 = arith.constant 0 : i32
    %c0_i32_0 = arith.constant 0 : i32
    %c0_i32_1 = arith.constant 0 : i32
    return %c0_i32, %c0_i32_0 : i32, i32
  }
  func.func @transform_5(%arg0: i32) -> (i32, i32) {
    %c0_i32 = arith.constant 0 : i32
    %c0_i32_0 = arith.constant 0 : i32
    %c0_i32_1 = arith.constant 0 : i32
    return %c0_i32, %c0_i32_0 : i32, i32
  }
  func.func @transform_6(%arg0: i32) -> (i32, i32) {
    %c0_i32 = arith.constant 0 : i32
    %c0_i32_0 = arith.constant 0 : i32
    %c0_i32_1 = arith.constant 0 : i32
    return %c0_i32, %c0_i32_0 : i32, i32
  }
  func.func @transform_7(%arg0: i32) -> (i32, i32) {
    %c0_i32 = arith.constant 0 : i32
    %c0_i32_0 = arith.constant 0 : i32
    %c0_i32_1 = arith.constant 0 : i32
    return %c0_i32, %c0_i32_0 : i32, i32
  }
  func.func @transform_8(%arg0: i32) -> (i32, i32, i32) {
    %c0_i32 = arith.constant 0 : i32
    %c0_i32_0 = arith.constant 0 : i32
    %c0_i32_1 = arith.constant 0 : i32
    return %arg0, %c0_i32, %c0_i32_0 : i32, i32, i32
  }
}

module attributes {stable_mosaic.version = 11 : i64} {
  func.func @_ln_kernel(%arg0: i32, %arg1: memref<16x32xf32, #tpu.memory_space<vmem>>, %arg2: memref<1x32xf32, #tpu.memory_space<vmem>>, %arg3: memref<1x32xf32, #tpu.memory_space<vmem>>, %arg4: memref<16x32xbf16, #tpu.memory_space<vmem>>) attributes {dimension_semantics = [#tpu.dimension_semantics<parallel>], iteration_bounds = array<i64: 1>, scalar_prefetch = 0 : i64, scratch_operands = 0 : i64, tpu.core_type = #tpu.core_type<tc>, window_params = [{transform_indices = @transform_0, window_bounds = array<i64: 16, 32>}, {pipeline_mode = #tpu.pipeline_mode<synchronous>, transform_indices = @transform_1, window_bounds = array<i64: 1, 32>}, {pipeline_mode = #tpu.pipeline_mode<synchronous>, transform_indices = @transform_2, window_bounds = array<i64: 1, 32>}, {transform_indices = @transform_3, window_bounds = array<i64: 16, 32>}]} {
    %c0 = arith.constant 0 : index
    %c0_0 = arith.constant 0 : index
    %0 = vector.load %arg1[%c0, %c0_0] : memref<16x32xf32, #tpu.memory_space<vmem>>, vector<16x32xf32>
    %c0_1 = arith.constant 0 : index
    %c0_2 = arith.constant 0 : index
    %1 = vector.load %arg2[%c0_1, %c0_2] : memref<1x32xf32, #tpu.memory_space<vmem>>, vector<1x32xf32>
    %c0_3 = arith.constant 0 : index
    %c0_4 = arith.constant 0 : index
    %2 = vector.load %arg3[%c0_3, %c0_4] : memref<1x32xf32, #tpu.memory_space<vmem>>, vector<1x32xf32>
    %cst = arith.constant dense<0.000000e+00> : vector<16xf32>
    %3 = vector.multi_reduction <add>, %0, %cst [1] : vector<16x32xf32> to vector<16xf32>
    %4 = vector.shape_cast %3 : vector<16xf32> to vector<16x1xf32>
    %cst_5 = arith.constant 3.200000e+01 : f32
    %5 = vector.broadcast %cst_5 : f32 to vector<16x1xf32>
    %6 = arith.divf %4, %5 : vector<16x1xf32>
    %7 = vector.broadcast %6 : vector<16x1xf32> to vector<16x32xf32>
    %8 = arith.subf %0, %7 : vector<16x32xf32>
    %9 = vector.broadcast %6 : vector<16x1xf32> to vector<16x32xf32>
    %10 = arith.subf %0, %9 : vector<16x32xf32>
    %11 = arith.mulf %8, %10 : vector<16x32xf32>
    %cst_6 = arith.constant dense<0.000000e+00> : vector<16xf32>
    %12 = vector.multi_reduction <add>, %11, %cst_6 [1] : vector<16x32xf32> to vector<16xf32>
    %13 = vector.shape_cast %12 : vector<16xf32> to vector<16x1xf32>
    %cst_7 = arith.constant 3.200000e+01 : f32
    %14 = vector.broadcast %cst_7 : f32 to vector<16x1xf32>
    %15 = arith.divf %13, %14 : vector<16x1xf32>
    %16 = vector.broadcast %6 : vector<16x1xf32> to vector<16x32xf32>
    %17 = arith.subf %0, %16 : vector<16x32xf32>
    %cst_8 = arith.constant 9.99999974E-6 : f32
    %18 = vector.broadcast %cst_8 : f32 to vector<16x1xf32>
    %19 = arith.addf %15, %18 : vector<16x1xf32>
    %20 = math.rsqrt %19 : vector<16x1xf32>
    %21 = vector.broadcast %20 : vector<16x1xf32> to vector<16x32xf32>
    %22 = arith.mulf %17, %21 : vector<16x32xf32>
    %23 = vector.broadcast %1 : vector<1x32xf32> to vector<16x32xf32>
    %24 = arith.mulf %22, %23 : vector<16x32xf32>
    %25 = vector.broadcast %2 : vector<1x32xf32> to vector<16x32xf32>
    %26 = arith.addf %24, %25 : vector<16x32xf32>
    %27 = arith.truncf %26 : vector<16x32xf32> to vector<16x32xbf16>
    %c0_9 = arith.constant 0 : index
    %c0_10 = arith.constant 0 : index
    %28 = vector.load %arg4[%c0_9, %c0_10] : memref<16x32xbf16, #tpu.memory_space<vmem>>, vector<16x32xbf16>
    tpu.vector_store %arg4[%c0_9, %c0_10], %27 {strides = array<i32>} : memref<16x32xbf16, #tpu.memory_space<vmem>>, vector<16x32xbf16>,
    return
  }
  func.func @transform_0(%arg0: i32) -> (i32, i32) {
    %c0_i32 = arith.constant 0 : i32
    %c0_i32_0 = arith.constant 0 : i32
    return %arg0, %c0_i32 : i32, i32
  }
  func.func @transform_1(%arg0: i32) -> (i32, i32) {
    %c0_i32 = arith.constant 0 : i32
    %c0_i32_0 = arith.constant 0 : i32
    %c0_i32_1 = arith.constant 0 : i32
    return %c0_i32, %c0_i32_0 : i32, i32
  }
  func.func @transform_2(%arg0: i32) -> (i32, i32) {
    %c0_i32 = arith.constant 0 : i32
    %c0_i32_0 = arith.constant 0 : i32
    %c0_i32_1 = arith.constant 0 : i32
    return %c0_i32, %c0_i32_0 : i32, i32
  }
  func.func @transform_3(%arg0: i32) -> (i32, i32) {
    %c0_i32 = arith.constant 0 : i32
    %c0_i32_0 = arith.constant 0 : i32
    return %arg0, %c0_i32 : i32, i32
  }
}

module attributes {stable_mosaic.version = 11 : i64} {
  func.func @_ffn_block_kernel(%arg0: i32, %arg1: memref<16x32xbf16, #tpu.memory_space<vmem>>, %arg2: memref<32x64xbf16, #tpu.memory_space<vmem>>, %arg3: memref<1x64xf32, #tpu.memory_space<vmem>>, %arg4: memref<64x32xbf16, #tpu.memory_space<vmem>>, %arg5: memref<1x32xf32, #tpu.memory_space<vmem>>, %arg6: memref<1x32xf32, #tpu.memory_space<vmem>>, %arg7: memref<1x32xf32, #tpu.memory_space<vmem>>, %arg8: memref<16x32xbf16, #tpu.memory_space<vmem>>) attributes {dimension_semantics = [#tpu.dimension_semantics<parallel>], iteration_bounds = array<i64: 1>, scalar_prefetch = 0 : i64, scratch_operands = 0 : i64, tpu.core_type = #tpu.core_type<tc>, window_params = [{transform_indices = @transform_0, window_bounds = array<i64: 16, 32>}, {pipeline_mode = #tpu.pipeline_mode<synchronous>, transform_indices = @transform_1, window_bounds = array<i64: 32, 64>}, {pipeline_mode = #tpu.pipeline_mode<synchronous>, transform_indices = @transform_2, window_bounds = array<i64: 1, 64>}, {pipeline_mode = #tpu.pipeline_mode<synchronous>, transform_indices = @transform_3, window_bounds = array<i64: 64, 32>}, {pipeline_mode = #tpu.pipeline_mode<synchronous>, transform_indices = @transform_4, window_bounds = array<i64: 1, 32>}, {pipeline_mode = #tpu.pipeline_mode<synchronous>, transform_indices = @transform_5, window_bounds = array<i64: 1, 32>}, {pipeline_mode = #tpu.pipeline_mode<synchronous>, transform_indices = @transform_6, window_bounds = array<i64: 1, 32>}, {transform_indices = @transform_7, window_bounds = array<i64: 16, 32>}]} {
    %c0 = arith.constant 0 : index
    %c0_0 = arith.constant 0 : index
    %0 = vector.load %arg1[%c0, %c0_0] : memref<16x32xbf16, #tpu.memory_space<vmem>>, vector<16x32xbf16>
    %c0_1 = arith.constant 0 : index
    %c0_2 = arith.constant 0 : index
    %1 = vector.load %arg2[%c0_1, %c0_2] : memref<32x64xbf16, #tpu.memory_space<vmem>>, vector<32x64xbf16>
    %cst = arith.constant dense<0.000000e+00> : vector<16x64xf32>
    %2 = tpu.matmul %0, %1, %cst {dimension_numbers = #tpu.dot_dimension_numbers<[1], [0], [0], [1], [0, 0, 1, 1], [], []>} : vector<16x32xbf16>, vector<32x64xbf16>, vector<16x64xf32> -> vector<16x64xf32>
    %c0_3 = arith.constant 0 : index
    %c0_4 = arith.constant 0 : index
    %3 = vector.load %arg3[%c0_3, %c0_4] : memref<1x64xf32, #tpu.memory_space<vmem>>, vector<1x64xf32>
    %4 = vector.broadcast %3 : vector<1x64xf32> to vector<16x64xf32>
    %5 = arith.addf %2, %4 : vector<16x64xf32>
    %cst_5 = arith.constant 5.000000e-01 : f32
    %6 = vector.broadcast %cst_5 : f32 to vector<16x64xf32>
    %7 = arith.mulf %6, %5 : vector<16x64xf32>
    %cst_6 = arith.constant 4.471500e-02 : f32
    %8 = vector.broadcast %cst_6 : f32 to vector<16x64xf32>
    %9 = arith.mulf %8, %5 : vector<16x64xf32>
    %10 = arith.mulf %9, %5 : vector<16x64xf32>
    %11 = arith.mulf %10, %5 : vector<16x64xf32>
    %12 = arith.addf %5, %11 : vector<16x64xf32>
    %cst_7 = arith.constant 0.797884583 : f32
    %13 = vector.broadcast %cst_7 : f32 to vector<16x64xf32>
    %14 = arith.mulf %13, %12 : vector<16x64xf32>
    %15 = math.tanh %14 : vector<16x64xf32>
    %cst_8 = arith.constant 1.000000e+00 : f32
    %16 = vector.broadcast %cst_8 : f32 to vector<16x64xf32>
    %17 = arith.addf %16, %15 : vector<16x64xf32>
    %18 = arith.mulf %7, %17 : vector<16x64xf32>
    %19 = arith.truncf %18 : vector<16x64xf32> to vector<16x64xbf16>
    %c0_9 = arith.constant 0 : index
    %c0_10 = arith.constant 0 : index
    %20 = vector.load %arg4[%c0_9, %c0_10] : memref<64x32xbf16, #tpu.memory_space<vmem>>, vector<64x32xbf16>
    %cst_11 = arith.constant dense<0.000000e+00> : vector<16x32xf32>
    %21 = tpu.matmul %19, %20, %cst_11 {dimension_numbers = #tpu.dot_dimension_numbers<[1], [0], [0], [1], [0, 0, 1, 1], [], []>} : vector<16x64xbf16>, vector<64x32xbf16>, vector<16x32xf32> -> vector<16x32xf32>
    %c0_12 = arith.constant 0 : index
    %c0_13 = arith.constant 0 : index
    %22 = vector.load %arg5[%c0_12, %c0_13] : memref<1x32xf32, #tpu.memory_space<vmem>>, vector<1x32xf32>
    %23 = vector.broadcast %22 : vector<1x32xf32> to vector<16x32xf32>
    %24 = arith.addf %21, %23 : vector<16x32xf32>
    %25 = arith.extf %0 : vector<16x32xbf16> to vector<16x32xf32>
    %26 = arith.addf %25, %24 : vector<16x32xf32>
    %c0_14 = arith.constant 0 : index
    %c0_15 = arith.constant 0 : index
    %27 = vector.load %arg6[%c0_14, %c0_15] : memref<1x32xf32, #tpu.memory_space<vmem>>, vector<1x32xf32>
    %c0_16 = arith.constant 0 : index
    %c0_17 = arith.constant 0 : index
    %28 = vector.load %arg7[%c0_16, %c0_17] : memref<1x32xf32, #tpu.memory_space<vmem>>, vector<1x32xf32>
    %cst_18 = arith.constant dense<0.000000e+00> : vector<16xf32>
    %29 = vector.multi_reduction <add>, %26, %cst_18 [1] : vector<16x32xf32> to vector<16xf32>
    %30 = vector.shape_cast %29 : vector<16xf32> to vector<16x1xf32>
    %cst_19 = arith.constant 3.200000e+01 : f32
    %31 = vector.broadcast %cst_19 : f32 to vector<16x1xf32>
    %32 = arith.divf %30, %31 : vector<16x1xf32>
    %33 = vector.broadcast %32 : vector<16x1xf32> to vector<16x32xf32>
    %34 = arith.subf %26, %33 : vector<16x32xf32>
    %35 = vector.broadcast %32 : vector<16x1xf32> to vector<16x32xf32>
    %36 = arith.subf %26, %35 : vector<16x32xf32>
    %37 = arith.mulf %34, %36 : vector<16x32xf32>
    %cst_20 = arith.constant dense<0.000000e+00> : vector<16xf32>
    %38 = vector.multi_reduction <add>, %37, %cst_20 [1] : vector<16x32xf32> to vector<16xf32>
    %39 = vector.shape_cast %38 : vector<16xf32> to vector<16x1xf32>
    %cst_21 = arith.constant 3.200000e+01 : f32
    %40 = vector.broadcast %cst_21 : f32 to vector<16x1xf32>
    %41 = arith.divf %39, %40 : vector<16x1xf32>
    %42 = vector.broadcast %32 : vector<16x1xf32> to vector<16x32xf32>
    %43 = arith.subf %26, %42 : vector<16x32xf32>
    %cst_22 = arith.constant 9.99999974E-6 : f32
    %44 = vector.broadcast %cst_22 : f32 to vector<16x1xf32>
    %45 = arith.addf %41, %44 : vector<16x1xf32>
    %46 = math.rsqrt %45 : vector<16x1xf32>
    %47 = vector.broadcast %46 : vector<16x1xf32> to vector<16x32xf32>
    %48 = arith.mulf %43, %47 : vector<16x32xf32>
    %49 = vector.broadcast %27 : vector<1x32xf32> to vector<16x32xf32>
    %50 = arith.mulf %48, %49 : vector<16x32xf32>
    %51 = vector.broadcast %28 : vector<1x32xf32> to vector<16x32xf32>
    %52 = arith.addf %50, %51 : vector<16x32xf32>
    %53 = arith.truncf %52 : vector<16x32xf32> to vector<16x32xbf16>
    %c0_23 = arith.constant 0 : index
    %c0_24 = arith.constant 0 : index
    %54 = vector.load %arg8[%c0_23, %c0_24] : memref<16x32xbf16, #tpu.memory_space<vmem>>, vector<16x32xbf16>
    tpu.vector_store %arg8[%c0_23, %c0_24], %53 {strides = array<i32>} : memref<16x32xbf16, #tpu.memory_space<vmem>>, vector<16x32xbf16>,
    return
  }
  func.func @transform_0(%arg0: i32) -> (i32, i32) {
    %c0_i32 = arith.constant 0 : i32
    %c0_i32_0 = arith.constant 0 : i32
    return %arg0, %c0_i32 : i32, i32
  }
  func.func @transform_1(%arg0: i32) -> (i32, i32) {
    %c0_i32 = arith.constant 0 : i32
    %c0_i32_0 = arith.constant 0 : i32
    %c0_i32_1 = arith.constant 0 : i32
    return %c0_i32, %c0_i32_0 : i32, i32
  }
  func.func @transform_2(%arg0: i32) -> (i32, i32) {
    %c0_i32 = arith.constant 0 : i32
    %c0_i32_0 = arith.constant 0 : i32
    %c0_i32_1 = arith.constant 0 : i32
    return %c0_i32, %c0_i32_0 : i32, i32
  }
  func.func @transform_3(%arg0: i32) -> (i32, i32) {
    %c0_i32 = arith.constant 0 : i32
    %c0_i32_0 = arith.constant 0 : i32
    %c0_i32_1 = arith.constant 0 : i32
    return %c0_i32, %c0_i32_0 : i32, i32
  }
  func.func @transform_4(%arg0: i32) -> (i32, i32) {
    %c0_i32 = arith.constant 0 : i32
    %c0_i32_0 = arith.constant 0 : i32
    %c0_i32_1 = arith.constant 0 : i32
    return %c0_i32, %c0_i32_0 : i32, i32
  }
  func.func @transform_5(%arg0: i32) -> (i32, i32) {
    %c0_i32 = arith.constant 0 : i32
    %c0_i32_0 = arith.constant 0 : i32
    %c0_i32_1 = arith.constant 0 : i32
    return %c0_i32, %c0_i32_0 : i32, i32
  }
  func.func @transform_6(%arg0: i32) -> (i32, i32) {
    %c0_i32 = arith.constant 0 : i32
    %c0_i32_0 = arith.constant 0 : i32
    %c0_i32_1 = arith.constant 0 : i32
    return %c0_i32, %c0_i32_0 : i32, i32
  }
  func.func @transform_7(%arg0: i32) -> (i32, i32) {
    %c0_i32 = arith.constant 0 : i32
    %c0_i32_0 = arith.constant 0 : i32
    return %arg0, %c0_i32 : i32, i32
  }
}

module attributes {stable_mosaic.version = 11 : i64} {
  func.func @_pool_cls_kernel(%arg0: i32, %arg1: memref<2x8x32xbf16, #tpu.memory_space<vmem>>, %arg2: memref<32x32xbf16, #tpu.memory_space<vmem>>, %arg3: memref<1x32xf32, #tpu.memory_space<vmem>>, %arg4: memref<32x16xbf16, #tpu.memory_space<vmem>>, %arg5: memref<1x16xf32, #tpu.memory_space<vmem>>, %arg6: memref<16x16xbf16, #tpu.memory_space<vmem>>, %arg7: memref<1x16xf32, #tpu.memory_space<vmem>>, %arg8: memref<16x128xbf16, #tpu.memory_space<vmem>>, %arg9: memref<1x128xf32, #tpu.memory_space<vmem>>, %arg10: memref<2x128xf32, #tpu.memory_space<vmem>>) attributes {dimension_semantics = [#tpu.dimension_semantics<parallel>], iteration_bounds = array<i64: 1>, scalar_prefetch = 0 : i64, scratch_operands = 0 : i64, tpu.core_type = #tpu.core_type<tc>, window_params = [{transform_indices = @transform_0, window_bounds = array<i64: 2, 8, 32>}, {pipeline_mode = #tpu.pipeline_mode<synchronous>, transform_indices = @transform_1, window_bounds = array<i64: 32, 32>}, {pipeline_mode = #tpu.pipeline_mode<synchronous>, transform_indices = @transform_2, window_bounds = array<i64: 1, 32>}, {pipeline_mode = #tpu.pipeline_mode<synchronous>, transform_indices = @transform_3, window_bounds = array<i64: 32, 16>}, {pipeline_mode = #tpu.pipeline_mode<synchronous>, transform_indices = @transform_4, window_bounds = array<i64: 1, 16>}, {pipeline_mode = #tpu.pipeline_mode<synchronous>, transform_indices = @transform_5, window_bounds = array<i64: 16, 16>}, {pipeline_mode = #tpu.pipeline_mode<synchronous>, transform_indices = @transform_6, window_bounds = array<i64: 1, 16>}, {pipeline_mode = #tpu.pipeline_mode<synchronous>, transform_indices = @transform_7, window_bounds = array<i64: 16, 128>}, {pipeline_mode = #tpu.pipeline_mode<synchronous>, transform_indices = @transform_8, window_bounds = array<i64: 1, 128>}, {transform_indices = @transform_9, window_bounds = array<i64: 2, 128>}]} {
    %c0 = arith.constant 0 : index
    %c0_0 = arith.constant 0 : index
    %c0_1 = arith.constant 0 : index
    %0 = vector.load %arg1[%c0, %c0_0, %c0_1] : memref<2x8x32xbf16, #tpu.memory_space<vmem>>, vector<2x8x32xbf16>
    %1 = arith.extf %0 : vector<2x8x32xbf16> to vector<2x8x32xf32>
    %cst = arith.constant dense<0.000000e+00> : vector<2x32xf32>
    %2 = vector.multi_reduction <add>, %1, %cst [1] : vector<2x8x32xf32> to vector<2x32xf32>
    %cst_2 = arith.constant 8.000000e+00 : f32
    %3 = vector.broadcast %cst_2 : f32 to vector<2x32xf32>
    %4 = arith.divf %2, %3 : vector<2x32xf32>
    %5 = arith.truncf %4 : vector<2x32xf32> to vector<2x32xbf16>
    %c0_3 = arith.constant 0 : index
    %c0_4 = arith.constant 0 : index
    %6 = vector.load %arg2[%c0_3, %c0_4] : memref<32x32xbf16, #tpu.memory_space<vmem>>, vector<32x32xbf16>
    %cst_5 = arith.constant dense<0.000000e+00> : vector<2x32xf32>
    %7 = tpu.matmul %5, %6, %cst_5 {dimension_numbers = #tpu.dot_dimension_numbers<[1], [0], [0], [1], [0, 0, 1, 1], [], []>} : vector<2x32xbf16>, vector<32x32xbf16>, vector<2x32xf32> -> vector<2x32xf32>
    %c0_6 = arith.constant 0 : index
    %c0_7 = arith.constant 0 : index
    %8 = vector.load %arg3[%c0_6, %c0_7] : memref<1x32xf32, #tpu.memory_space<vmem>>, vector<1x32xf32>
    %9 = vector.broadcast %8 : vector<1x32xf32> to vector<2x32xf32>
    %10 = arith.addf %7, %9 : vector<2x32xf32>
    %11 = math.tanh %10 : vector<2x32xf32>
    %12 = arith.truncf %11 : vector<2x32xf32> to vector<2x32xbf16>
    %c0_8 = arith.constant 0 : index
    %c0_9 = arith.constant 0 : index
    %13 = vector.load %arg4[%c0_8, %c0_9] : memref<32x16xbf16, #tpu.memory_space<vmem>>, vector<32x16xbf16>
    %cst_10 = arith.constant dense<0.000000e+00> : vector<2x16xf32>
    %14 = tpu.matmul %12, %13, %cst_10 {dimension_numbers = #tpu.dot_dimension_numbers<[1], [0], [0], [1], [0, 0, 1, 1], [], []>} : vector<2x32xbf16>, vector<32x16xbf16>, vector<2x16xf32> -> vector<2x16xf32>
    %c0_11 = arith.constant 0 : index
    %c0_12 = arith.constant 0 : index
    %15 = vector.load %arg5[%c0_11, %c0_12] : memref<1x16xf32, #tpu.memory_space<vmem>>, vector<1x16xf32>
    %16 = vector.broadcast %15 : vector<1x16xf32> to vector<2x16xf32>
    %17 = arith.addf %14, %16 : vector<2x16xf32>
    %18 = math.tanh %17 : vector<2x16xf32>
    %19 = arith.truncf %18 : vector<2x16xf32> to vector<2x16xbf16>
    %c0_13 = arith.constant 0 : index
    %c0_14 = arith.constant 0 : index
    %20 = vector.load %arg6[%c0_13, %c0_14] : memref<16x16xbf16, #tpu.memory_space<vmem>>, vector<16x16xbf16>
    %cst_15 = arith.constant dense<0.000000e+00> : vector<2x16xf32>
    %21 = tpu.matmul %19, %20, %cst_15 {dimension_numbers = #tpu.dot_dimension_numbers<[1], [0], [0], [1], [0, 0, 1, 1], [], []>} : vector<2x16xbf16>, vector<16x16xbf16>, vector<2x16xf32> -> vector<2x16xf32>
    %c0_16 = arith.constant 0 : index
    %c0_17 = arith.constant 0 : index
    %22 = vector.load %arg7[%c0_16, %c0_17] : memref<1x16xf32, #tpu.memory_space<vmem>>, vector<1x16xf32>
    %23 = vector.broadcast %22 : vector<1x16xf32> to vector<2x16xf32>
    %24 = arith.addf %21, %23 : vector<2x16xf32>
    %25 = math.tanh %24 : vector<2x16xf32>
    %26 = arith.truncf %25 : vector<2x16xf32> to vector<2x16xbf16>
    %c0_18 = arith.constant 0 : index
    %c0_19 = arith.constant 0 : index
    %27 = vector.load %arg8[%c0_18, %c0_19] : memref<16x128xbf16, #tpu.memory_space<vmem>>, vector<16x128xbf16>
    %cst_20 = arith.constant dense<0.000000e+00> : vector<2x128xf32>
    %28 = tpu.matmul %26, %27, %cst_20 {dimension_numbers = #tpu.dot_dimension_numbers<[1], [0], [0], [1], [0, 0, 1, 1], [], []>} : vector<2x16xbf16>, vector<16x128xbf16>, vector<2x128xf32> -> vector<2x128xf32>
    %c0_21 = arith.constant 0 : index
    %c0_22 = arith.constant 0 : index
    %29 = vector.load %arg9[%c0_21, %c0_22] : memref<1x128xf32, #tpu.memory_space<vmem>>, vector<1x128xf32>
    %30 = vector.broadcast %29 : vector<1x128xf32> to vector<2x128xf32>
    %31 = arith.addf %28, %30 : vector<2x128xf32>
    %c0_23 = arith.constant 0 : index
    %c0_24 = arith.constant 0 : index
    %32 = vector.load %arg10[%c0_23, %c0_24] : memref<2x128xf32, #tpu.memory_space<vmem>>, vector<2x128xf32>
    tpu.vector_store %arg10[%c0_23, %c0_24], %31 {strides = array<i32>} : memref<2x128xf32, #tpu.memory_space<vmem>>, vector<2x128xf32>,
    return
  }
  func.func @transform_0(%arg0: i32) -> (i32, i32, i32) {
    %c0_i32 = arith.constant 0 : i32
    %c0_i32_0 = arith.constant 0 : i32
    %c0_i32_1 = arith.constant 0 : i32
    return %arg0, %c0_i32, %c0_i32_0 : i32, i32, i32
  }
  func.func @transform_1(%arg0: i32) -> (i32, i32) {
    %c0_i32 = arith.constant 0 : i32
    %c0_i32_0 = arith.constant 0 : i32
    %c0_i32_1 = arith.constant 0 : i32
    return %c0_i32, %c0_i32_0 : i32, i32
  }
  func.func @transform_2(%arg0: i32) -> (i32, i32) {
    %c0_i32 = arith.constant 0 : i32
    %c0_i32_0 = arith.constant 0 : i32
    %c0_i32_1 = arith.constant 0 : i32
    return %c0_i32, %c0_i32_0 : i32, i32
  }
  func.func @transform_3(%arg0: i32) -> (i32, i32) {
    %c0_i32 = arith.constant 0 : i32
    %c0_i32_0 = arith.constant 0 : i32
    %c0_i32_1 = arith.constant 0 : i32
    return %c0_i32, %c0_i32_0 : i32, i32
  }
  func.func @transform_4(%arg0: i32) -> (i32, i32) {
    %c0_i32 = arith.constant 0 : i32
    %c0_i32_0 = arith.constant 0 : i32
    %c0_i32_1 = arith.constant 0 : i32
    return %c0_i32, %c0_i32_0 : i32, i32
  }
  func.func @transform_5(%arg0: i32) -> (i32, i32) {
    %c0_i32 = arith.constant 0 : i32
    %c0_i32_0 = arith.constant 0 : i32
    %c0_i32_1 = arith.constant 0 : i32
    return %c0_i32, %c0_i32_0 : i32, i32
  }
  func.func @transform_6(%arg0: i32) -> (i32, i32) {
    %c0_i32 = arith.constant 0 : i32
    %c0_i32_0 = arith.constant 0 : i32
    %c0_i32_1 = arith.constant 0 : i32
    return %c0_i32, %c0_i32_0 : i32, i32
  }
  func.func @transform_7(%arg0: i32) -> (i32, i32) {
    %c0_i32 = arith.constant 0 : i32
    %c0_i32_0 = arith.constant 0 : i32
    %c0_i32_1 = arith.constant 0 : i32
    return %c0_i32, %c0_i32_0 : i32, i32
  }
  func.func @transform_8(%arg0: i32) -> (i32, i32) {
    %c0_i32 = arith.constant 0 : i32
    %c0_i32_0 = arith.constant 0 : i32
    %c0_i32_1 = arith.constant 0 : i32
    return %c0_i32, %c0_i32_0 : i32, i32
  }
  func.func @transform_9(%arg0: i32) -> (i32, i32) {
    %c0_i32 = arith.constant 0 : i32
    %c0_i32_0 = arith.constant 0 : i32
    return %arg0, %c0_i32 : i32, i32
  }
}

</mosaic_0001>

<bundles_post_ra>
// kernel: roberta_classifier_forward.6
= control target key start
LH: loop header
LB: loop body
LE: loop exit
PB: predicated region body
PF: predicated region fallthrough
CT: control target
= control target key end

     0   :  { %vm18_vm0 = vcmask 261120   ;;  %v98_v4 = vmov 32.0   ;;  %vm82_vm6 = vcmask 257024   ;;  %s141_s0 = inlined_call_operand.vmem [shape: f32[16,32], index: 0, kind: input, shape index: {}]   ;;  %s142_s1 = inlined_call_operand.vmem [shape: f32[1,32], index: 1, kind: input, shape index: {}]   ;;  %s143_s2 = inlined_call_operand.vmem [shape: f32[1,32], index: 2, kind: input, shape index: {}]   ;;  %s144_s3 = inlined_call_operand.vmem [shape: bf16[16,32], index: 3, kind: output, shape index: {}]  }
   0x1   :  { %v14_v0 = vld [vmem:[%s141_s0] sm:$0xff]  ;;  %v15_v2 = vld [vmem:[%s141_s0 + $0x8] sm:$0xff]  ;;  %92 = vrcp.f32 %v98_v4 }
   0x2   :  { %v19_v1 = vsel %vm18_vm0, %v14_v0, 0.0  ;;  %v22_v3 = vsel %vm18_vm0, %v15_v2, 0.0  ;;  %v90_v35 = vld [vmem:[%s142_s1] ss:$0 sm:$0xff] }
   0x3   :  { %20 = vadd.xlane.f32.xlu0 %v19_v1  ;;  %v91_v38 = vld [vmem:[%s143_s2] ss:$0 sm:$0xff] }
   0x7   :  { %v93_v5 = vpop.eup %92 }
   0x8   :  { %v26_v6 = vmul.f32 32.0, %v93_v5  ;;  %vm30_vm1 = vweird.f32 %v93_v5 }
   0xa   :  { %v27_v7 = vsub.f32 1.0, %v26_v6 }
   0xb   :  { %23 = vadd.xlane.f32.xlu0 %v22_v3 }
   0xc   :  { %v28_v8 = vmul.f32 %v93_v5, %v27_v7 }
   0xe   :  { %v29_v9 = vadd.f32 %v93_v5, %v28_v8 }
  0x10   :  { %v31_v10 = vsel %vm30_vm1, %v93_v5, %v29_v9 }
  0x76   :  { %v21_v11 = vpop.xlane.xlu0 %20 }
  0x77   :  { %v32_v12 = vmul.f32 %v31_v10, %v21_v11 }
  0x79   :  { %v34_v13 = vsub.f32 %v14_v0, %v32_v12 }
  0x7b   :  { %v36_v14 = vmul.f32 %v34_v13, %v34_v13 }
  0x7d   :  { %v38_v15 = vsel %vm18_vm0, %v36_v14, 0.0 }
  0x7e   :  { %39 = vadd.xlane.f32.xlu1 %v38_v15  ;;  %v24_v16 = vpop.xlane.xlu0 %23 }
  0x7f   :  { %v33_v17 = vmul.f32 %v31_v10, %v24_v16 }
  0x81   :  { %v35_v18 = vsub.f32 %v15_v2, %v33_v17 }
  0x83   :  { %v37_v19 = vmul.f32 %v35_v18, %v35_v18 }
  0x85   :  { %v41_v20 = vsel %vm18_vm0, %v37_v19, 0.0 }
  0x86   :  { %42 = vadd.xlane.f32.xlu1 %v41_v20 }
  0xf1   :  { %v40_v21 = vpop.xlane.xlu1 %39 }
  0xf2   :  { %v44_v22 = vmul.f32 %v40_v21, %v31_v10 }
  0xf4   :  { %v46_v23 = vadd.f32 1e-05, %v44_v22 }
  0xf6   :  { %94 = vrsqrt.f32 %v46_v23  ;;  %vm54_vm3 = vweird.f32 %v46_v23 }
  0xf9   :  { %v43_v24 = vpop.xlane.xlu1 %42 }
  0xfa   :  { %v45_v25 = vmul.f32 %v43_v24, %v31_v10 }
  0xfc   :  { %v95_v26 = vpop.eup %94  ;;  %v47_v27 = vadd.f32 1e-05, %v45_v25 }
  0xfd   :  { %v49_v28 = vmul.f32 %v95_v26, %v46_v23  ;;  %vm55_vm2 = vweird.f32 %v95_v26 }
  0xfe   :  { %96 = vrsqrt.f32 %v47_v27  ;;  %vm56_vm4 = vmor %vm54_vm3, %vm55_vm2  ;;  %vm64_vm7 = vweird.f32 %v47_v27 }
  0xff   :  { %v50_v29 = vmul.f32 %v95_v26, %v49_v28 }
 0x101   :  { %v51_v30 = vmul.f32 0.5, %v50_v29 }
 0x103   :  { %v52_v31 = vsub.f32 1.5, %v51_v30 }
 0x104   :  { %v97_v32 = vpop.eup %96 }
 0x105   :  { %v53_v33 = vmul.f32 %v95_v26, %v52_v31  ;;  %v59_v34 = vmul.f32 %v97_v32, %v47_v27  ;;  %vm65_vm5 = vweird.f32 %v97_v32 }
 0x106   :  { %vm66_vm8 = vmor %vm64_vm7, %vm65_vm5 }
 0x107   :  { %v57_v36 = vsel %vm56_vm4, %v95_v26, %v53_v33  ;;  %v60_v37 = vmul.f32 %v97_v32, %v59_v34 }
 0x108   :  { %v68_v39 = vmul.f32 %v57_v36, %v34_v13 }
 0x109   :  { %v61_v40 = vmul.f32 0.5, %v60_v37 }
 0x10a   :  { %v73_v41 = vmul.f32 %v90_v35, %v68_v39 }
 0x10b   :  { %v62_v42 = vsub.f32 1.5, %v61_v40 }
 0x10c   :  { %v78_v43 = vadd.f32 %v91_v38, %v73_v41 }
 0x10d   :  { %v63_v44 = vmul.f32 %v97_v32, %v62_v42 }
 0x10e   :  { %v80_v45 = vpack.c.bf16 %v78_v43, %v78_v43 }
 0x10f   :  { %v67_v46 = vsel %vm66_vm8, %v97_v32, %v63_v44 }
 0x110   :  { %83 = vst.msk [vmem:[%s144_s3] sm:$0xf] %vm82_vm6, %v80_v45  ;;  %v69_v47 = vmul.f32 %v67_v46, %v35_v18 }
 0x112   :  { %v74_v48 = vmul.f32 %v90_v35, %v69_v47 }
 0x114   :  { %v79_v49 = vadd.f32 %v91_v38, %v74_v48 }
 0x116   :  { %v81_v50 = vpack.c.bf16 %v79_v49, %v79_v49 }
 0x118   :  { %84 = vst.msk [vmem:[%s144_s3 + $0x4] sm:$0xf] %vm82_vm6, %v81_v50 }

// kernel: roberta_classifier_forward.8
= control target key start
LH: loop header
LB: loop body
LE: loop exit
PB: predicated region body
PF: predicated region fallthrough
CT: control target
= control target key end

     0   :  { %vm54_vm0 = vcmask 261120   ;;  %vm127_vm1 = vcmask 523264   ;;  %v273_v43 = vmov 32.0   ;;  %vm214_vm7 = vcmask 257024   ;;  %s361_s1 = inlined_call_operand.vmem [shape: bf16[32,64], index: 1, kind: input, shape index: {}]   ;;  %s362_s2 = inlined_call_operand.vmem [shape: f32[1,64], index: 2, kind: input, shape index: {}]   ;;  %s363_s0 = inlined_call_operand.vmem [shape: bf16[16,32], index: 0, kind: input, shape index: {}]   ;;  %s364_s4 = inlined_call_operand.vmem [shape: f32[1,32], index: 4, kind: input, shape index: {}]   ;;  %s365_s3 = inlined_call_operand.vmem [shape: bf16[64,32], index: 3, kind: input, shape index: {}]   ;;  %s366_s5 = inlined_call_operand.vmem [shape: f32[1,32], index: 5, kind: input, shape index: {}]   ;;  %s367_s6 = inlined_call_operand.vmem [shape: f32[1,32], index: 6, kind: input, shape index: {}]   ;;  %s368_s7 = inlined_call_operand.vmem [shape: bf16[16,32], index: 7, kind: output, shape index: {}]  }
   0x1   :  { %v253_v0 = vld [vmem:[%s361_s1 + $0x8] sm:$0xff]  ;;  %v252_v1 = vld [vmem:[%s361_s1] sm:$0xff]  ;;  %v257_v3 = vld [vmem:[%s365_s3 + $0x18] sm:$0xff] }
   0x2   :  { %64 = vmatpush.bf16.msra.mxu0 %v253_v0  ;;  %v251_v2 = vld [vmem:[%s363_s0] sm:$0xff]  ;;  %135 = vmatpush.bf16.msra.mxu1 %v257_v3  ;;  %v256_v4 = vld [vmem:[%s365_s3 + $0x10] sm:$0xff]  ;;  %v255_v5 = vld [vmem:[%s365_s3 + $0x8] sm:$0xff] }
   0x3   :  { %v254_v6 = vld [vmem:[%s365_s3] sm:$0xff] }
   0x4   :  { %v259_v7 = vld [vmem:[%s362_s2] ss:$0 sm:$0xff] }
   0x5   :  { %v27_v31 = vld [vmem:[%s363_s0] sm:$0xff]  }
   0x6   :  { %65 = vmatpush.bf16.msra.mxu0 %v252_v1  ;;  %136 = vmatpush.bf16.msra.mxu1 %v256_v4  ;;  %v260_v32 = vld [vmem:[%s364_s4] ss:$0 sm:$0xff]  ;;  %v145_v33 = vunpack.c.l.bf16 %v27_v31  ;;  %v146_v38 = vunpack.c.h.bf16 %v27_v31 }
   0x9   :  { %233 = vmatmul.msk.bf16.vlgmr.msra.gmra.mxu0 %vm54_vm0, %v251_v2 }
   0xa   :  { %137 = vmatpush.bf16.msra.mxu1 %v255_v5 }
   0xe   :  { %138 = vmatpush.bf16.msra.mxu1 %v254_v6 }
  0x86   :  { %v67_v8 = vpop.f32.mrf.mxu0 }
  0x87   :  { %v68_v9 = vadd.f32 %v259_v7, %v67_v8 }
  0x89   :  { %v74_v10 = vmul.f32 0.044715, %v68_v9  ;;  %v72_v25 = vmul.f32 0.5, %v68_v9 }
  0x8b   :  { %v76_v11 = vmul.f32 %v74_v10, %v68_v9  ;;  %v261_v10 = vld [vmem:[%s366_s5] ss:$0 sm:$0xff] }
  0x8d   :  { %v78_v12 = vmul.f32 %v76_v11, %v68_v9 }
  0x8e   :  { %v69_v13 = vpop.f32.mrf.mxu0 }
  0x8f   :  { %v70_v14 = vadd.f32 %v259_v7, %v69_v13  ;;  %v80_v15 = vadd.f32 %v78_v12, %v68_v9  ;;  %v262_v13 = vld [vmem:[%s367_s6] ss:$0 sm:$0xff] }
  0x91   :  { %v75_v16 = vmul.f32 0.044715, %v70_v14  ;;  %v82_v18 = vmul.f32 0.7978846, %v80_v15  ;;  %v73_v26 = vmul.f32 0.5, %v70_v14 }
  0x93   :  { %v77_v17 = vmul.f32 %v75_v16, %v70_v14  ;;  %263 = vtanh.f32 %v82_v18 }
  0x95   :  { %v79_v19 = vmul.f32 %v77_v17, %v70_v14 }
  0x97   :  { %v81_v20 = vadd.f32 %v79_v19, %v70_v14 }
  0x99   :  { %v83_v21 = vmul.f32 0.7978846, %v81_v20  ;;  %v264_v22 = vpop.eup %263 }
  0x9a   :  { %v86_v23 = vadd.f32 1.0, %v264_v22 }
  0x9b   :  { %265 = vtanh.f32 %v83_v21 }
  0x9c   :  { %v88_v28 = vmul.f32 %v86_v23, %v72_v25  ;;  %267 = vrcp.f32 %v273_v43 }
  0xa1   :  { %v266_v24 = vpop.eup %265 }
  0xa2   :  { %v87_v27 = vadd.f32 1.0, %v266_v24  ;;  %v268_v44 = vpop.eup %267 }
  0xa3   :  { %v158_v45 = vmul.f32 32.0, %v268_v44  ;;  %vm162_vm2 = vweird.f32 %v268_v44 }
  0xa4   :  { %v89_v29 = vmul.f32 %v87_v27, %v73_v26 }
  0xa5   :  { %v159_v46 = vsub.f32 1.0, %v158_v45 }
  0xa6   :  { %v90_v30 = vpack.c.bf16 %v89_v29, %v88_v28 }
  0xa7   :  { %v160_v47 = vmul.f32 %v268_v44, %v159_v46 }
  0xa8   :  { %250 = vmatmul.msk.bf16.vlgmr.msra.gmra.mxu1 %vm127_vm1, %v90_v30 }
  0xa9   :  { %v161_v48 = vadd.f32 %v268_v44, %v160_v47 }
  0xab   :  { %v163_v49 = vsel %vm162_vm2, %v268_v44, %v161_v48 }
 0x125   :  { %v140_v34 = vpop.f32.mrf.mxu1 }
 0x126   :  { %v141_v35 = vadd.f32 %v260_v32, %v140_v34 }
 0x128   :  { %v147_v36 = vadd.f32 %v145_v33, %v141_v35 }
 0x12a   :  { %v151_v37 = vsel %vm54_vm0, %v147_v36, 0.0 }
 0x12b   :  { %152 = vadd.xlane.f32.xlu0 %v151_v37 }
 0x12d   :  { %v142_v39 = vpop.f32.mrf.mxu1 }
 0x12e   :  { %v143_v40 = vadd.f32 %v260_v32, %v142_v39 }
 0x130   :  { %v148_v41 = vadd.f32 %v146_v38, %v143_v40 }
 0x132   :  { %v154_v42 = vsel %vm54_vm0, %v148_v41, 0.0 }
 0x133   :  { %155 = vadd.xlane.f32.xlu0 %v154_v42 }
 0x19e   :  { %v153_v50 = vpop.xlane.xlu0 %152 }
 0x19f   :  { %v164_v51 = vmul.f32 %v163_v49, %v153_v50 }
 0x1a1   :  { %v166_v52 = vsub.f32 %v147_v36, %v164_v51 }
 0x1a3   :  { %v168_v53 = vmul.f32 %v166_v52, %v166_v52 }
 0x1a5   :  { %v170_v54 = vsel %vm54_vm0, %v168_v53, 0.0 }
 0x1a6   :  { %171 = vadd.xlane.f32.xlu1 %v170_v54  ;;  %v156_v55 = vpop.xlane.xlu0 %155 }
 0x1a7   :  { %v165_v56 = vmul.f32 %v163_v49, %v156_v55 }
 0x1a9   :  { %v167_v57 = vsub.f32 %v148_v41, %v165_v56 }
 0x1ab   :  { %v169_v58 = vmul.f32 %v167_v57, %v167_v57 }
 0x1ad   :  { %v173_v59 = vsel %vm54_vm0, %v169_v58, 0.0 }
 0x1ae   :  { %174 = vadd.xlane.f32.xlu1 %v173_v59 }
 0x219   :  { %v172_v60 = vpop.xlane.xlu1 %171 }
 0x21a   :  { %v176_v61 = vmul.f32 %v172_v60, %v163_v49 }
 0x21c   :  { %v178_v62 = vadd.f32 1e-05, %v176_v61 }
 0x21e   :  { %269 = vrsqrt.f32 %v178_v62  ;;  %vm186_vm4 = vweird.f32 %v178_v62 }
 0x221   :  { %v175_v63 = vpop.xlane.xlu1 %174 }
 0x222   :  { %v177_v0 = vmul.f32 %v175_v63, %v163_v49 }
 0x224   :  { %v270_v1 = vpop.eup %269  ;;  %v179_v2 = vadd.f32 1e-05, %v177_v0 }
 0x225   :  { %v181_v3 = vmul.f32 %v270_v1, %v178_v62  ;;  %vm187_vm3 = vweird.f32 %v270_v1 }
 0x226   :  { %271 = vrsqrt.f32 %v179_v2  ;;  %vm188_vm5 = vmor %vm186_vm4, %vm187_vm3  ;;  %vm196_vm8 = vweird.f32 %v179_v2 }
 0x227   :  { %v182_v4 = vmul.f32 %v270_v1, %v181_v3 }
 0x229   :  { %v183_v5 = vmul.f32 0.5, %v182_v4 }
 0x22b   :  { %v184_v6 = vsub.f32 1.5, %v183_v5 }
 0x22c   :  { %v272_v7 = vpop.eup %271 }
 0x22d   :  { %v185_v8 = vmul.f32 %v270_v1, %v184_v6  ;;  %v191_v9 = vmul.f32 %v272_v7, %v179_v2  ;;  %vm197_vm6 = vweird.f32 %v272_v7 }
 0x22e   :  { %vm198_vm9 = vmor %vm196_vm8, %vm197_vm6 }
 0x22f   :  { %v189_v11 = vsel %vm188_vm5, %v270_v1, %v185_v8  ;;  %v192_v12 = vmul.f32 %v272_v7, %v191_v9 }
 0x230   :  { %v200_v14 = vmul.f32 %v189_v11, %v166_v52 }
 0x231   :  { %v193_v15 = vmul.f32 0.5, %v192_v12 }
 0x232   :  { %v205_v16 = vmul.f32 %v261_v10, %v200_v14 }
 0x233   :  { %v194_v17 = vsub.f32 1.5, %v193_v15 }
 0x234   :  { %v210_v18 = vadd.f32 %v262_v13, %v205_v16 }
 0x235   :  { %v195_v19 = vmul.f32 %v272_v7, %v194_v17 }
 0x236   :  { %v212_v20 = vpack.c.bf16 %v210_v18, %v210_v18 }
 0x237   :  { %v199_v21 = vsel %vm198_vm9, %v272_v7, %v195_v19 }
 0x238   :  { %215 = vst.msk [vmem:[%s368_s7] sm:$0xf] %vm214_vm7, %v212_v20  ;;  %v201_v22 = vmul.f32 %v199_v21, %v167_v57 }
 0x23a   :  { %v206_v23 = vmul.f32 %v261_v10, %v201_v22 }
 0x23c   :  { %v211_v24 = vadd.f32 %v262_v13, %v206_v23 }
 0x23e   :  { %v213_v25 = vpack.c.bf16 %v211_v24, %v211_v24 }
 0x240   :  { %216 = vst.msk [vmem:[%s368_s7 + $0x4] sm:$0xf] %vm214_vm7, %v213_v25 }

// kernel: roberta_classifier_forward.7
= control target key start
LH: loop header
LB: loop body
LE: loop exit
PB: predicated region body
PF: predicated region fallthrough
CT: control target
= control target key end

     0   :  { %s917_s27 = smov 0   ;;  %s1017_s0 = inlined_call_operand.vmem [shape: bf16[2,8,32], index: 0, kind: input, shape index: {}]   ;;  %s1018_s1 = inlined_call_operand.vmem [shape: f32[2,1,8], index: 1, kind: input, shape index: {}]   ;;  %s1019_s2 = inlined_call_operand.vmem [shape: bf16[32,96], index: 2, kind: input, shape index: {}]   ;;  %s1020_s3 = inlined_call_operand.vmem [shape: f32[1,96], index: 3, kind: input, shape index: {}]   ;;  %s1021_s4 = inlined_call_operand.vmem [shape: bf16[32,32], index: 4, kind: input, shape index: {}]   ;;  %s1022_s5 = inlined_call_operand.vmem [shape: f32[1,32], index: 5, kind: input, shape index: {}]   ;;  %s1023_s6 = inlined_call_operand.vmem [shape: f32[1,32], index: 6, kind: input, shape index: {}]   ;;  %s1024_s7 = inlined_call_operand.vmem [shape: f32[1,32], index: 7, kind: input, shape index: {}]   ;;  %s1025_s8 = inlined_call_operand.vmem [shape: bf16[2,8,32], index: 8, kind: output, shape index: {}]  }
   0x1 LB: > { %s762_s28 = sadd.s32 4294967295, %s855_s27   ;;  %p766_p0 = scmp.ge.s32.totalorder %s855_s27, 1  ;;  %s855_s27 = sphi %s917_s27, %s18_s27  }
   0x2   : > { %p269_p1 = scmp.lt.s32.totalorder %s855_s27, 3 }
   0x4   : > { %p270_p2 = pnand %p766_p0, %p269_p1 }
   0x5   : > { %p304_p3 = scmp.lt.s32.totalorder (!%p270_p2), %s762_s28, 1  ;;  %s857_s20 = smov (!%p270_p2), 96  }
   0x6   : > { %273 = sbr.rel (%p270_p2) target bundleno = 1226 (0x4ca), region = 52  ;;  %s858_s21 = smov (!%p270_p2), 104  }
   0x7   : > { %s859_s22 = smov (!%p270_p2), 120   ;;  %s860_s23 = smov (!%p270_p2), 88  }
   0x8   : > { %s861_s24 = smov (!%p270_p2), 80   ;;  %s862_s25 = smov (!%p270_p2), 72  }
   0x9   : > { %s863_s26 = smov (!%p270_p2), 112   ;;  %s864_s29 = smov (!%p270_p2), 64  }
   0xa   : > { %s865_s30 = smov (!%p270_p2), 56   ;;  %s866_s12 = smov (!%p270_p2), 48  }
   0xb   : > { %v798_v0 = vld [vmem:[%s1019_s2 + $0x8] sm:$0xff]  ;;  %v797_v1 = vld [vmem:[%s1019_s2] sm:$0xff]  ;;  %s1027_s28 = smov (!%p304_p3, %s762_s28), 1  ;;  %vm338_vm0 = vcmask 261120   ;;  %vm365_vm1 = vcmask 64512   ;;  %vm403_vm2 = vcmask 1043456  }
   0xc   : > { %348 = vmatpush.bf16.msra.mxu0 %v798_v0  ;;  %s767_s11 = sshll.u32 %s1027_s28, 2  ;;  %s310_s14 = scalar_lea.vmem %s1018_s1, %s1027_s28  ;;  %v825_v3 = vld [vmem:[%s1020_s3] ss:$0 sm:$0xff]  ;;  %vm487_vm3 = vcmask 130112   ;;  %vm552_vm4 = vcmask 195712   ;;  %vm617_vm5 = vcmask 261312  }
   0xd   : > { %s307_s17 = scalar_lea.vmem %s1017_s0, %s767_s11  ;;  %v824_v25 = vld [vmem:[%s310_s14] ss:$0 sm:$0xff]  ;;  %s867_s13 = smov 40   ;;  %vm698_vm10 = vcmask 257024  }
   0xe   : > { %v943_v2 = vld [vmem:[%s307_s17] sm:$0xf]  ;;  %s868_s14 = smov 8   ;;  %s869_s15 = smov 16  }
   0xf   : > { %s870_s16 = smov 24   ;;  %s314_s9 = scalar_lea.vmem %s1025_s8, %s767_s11 }
  0x10   : > { %349 = vmatpush.bf16.msra.mxu0 %v797_v1 }
  0x13   : > { %777 = vmatmul.msk.bf16.vlgmr.msra.gmra.mxu0 %vm338_vm0, %v943_v2 }
  0x90   : > { %v351_v4 = vpop.f32.mrf.mxu0 }
  0x91   : > { %v352_v5 = vadd.f32 %v825_v3, %v351_v4 }
  0x93   : > { %v359_v6 = vmul.f32 0.35355338, %v352_v5  ;;  %v950_v7 = vpack.c.bf16 %v352_v5, %v352_v5 }
  0x95   : > { %v360_v8 = vpack.c.bf16 %v359_v6, %v359_v6  ;;  %363 = vrot.lane.b32.xlu0 %v950_v7, %s857_s20 }
  0x97   : > { %554 = vrot.lane.b32.xlu2 %v360_v8, %s858_s21  ;;  %424 = vrot.lane.b32.xlu1 %v360_v8, %s859_s22 }
  0x98   : > { %v353_v9 = vpop.f32.mrf.mxu0 }
  0x9d   : > { %426 = vrot.lane.b32.xlu0 %v950_v7, %s860_s23 }
  0x9f   : > { %491 = vrot.lane.b32.xlu2 %v950_v7, %s861_s24  ;;  %556 = vrot.lane.b32.xlu1 %v950_v7, %s862_s25 }
  0xa5   : > { %489 = vrot.lane.b32.xlu0 %v360_v8, %s863_s26 }
  0xa7   : > { %398 = vrot.lane.b32.xlu2 %v950_v7, %s864_s29 }
  0xaf   : > { %460 = vrot.lane.b32.xlu2 %v950_v7, %s865_s30 }
  0xf1   : > { %v555_v10 = vpop.permute.xlu2 %554 }
  0xf9   : > { %v492_v11 = vpop.permute.xlu2 %491 }
  0xfa   : > { %v497_v12 = vsel %vm365_vm1, %v492_v11, 0 }
  0xfb   : > { %506 = vmatpush.bf16.xpose.msrb.mxu0 %v497_v12 }
 0x101   : > { %v399_v13 = vpop.permute.xlu2 %398 }
 0x102   : > { %v405_v14 = vsel %vm403_vm2, %v399_v13, 0 }
 0x103   : > { %414 = vmatpush.bf16.msra.mxu2 %v405_v14 }
 0x107   : > { %v364_v15 = vpop.permute.xlu0 %363 }
 0x108   : > { %v370_v16 = vsel %vm365_vm1, %v364_v15, 0 }
 0x109   : > { %379 = vmatpush.bf16.xpose.msra.mxu1 %v370_v16  ;;  %v461_v17 = vpop.permute.xlu2 %460  ;;  %v425_v18 = vpop.permute.xlu1 %424 }
 0x10a   : > { %v466_v19 = vsel %vm403_vm2, %v461_v17, 0 }
 0x10b   : > { %475 = vmatpush.bf16.msrb.mxu2 %v466_v19 }
 0x10f   : > { %v427_v20 = vpop.permute.xlu0 %426 }
 0x110   : > { %778 = vmatmul.msk.bf16.vlgmr.msra.gmra.mxu1 %vm365_vm1, %v360_v8  ;;  %v432_v21 = vsel %vm365_vm1, %v427_v20, 0 }
 0x111   : > { %441 = vmatpush.bf16.xpose.msra.mxu3 %v432_v21  ;;  %v557_v22 = vpop.permute.xlu1 %556 }
 0x112   : > { %v562_v23 = vsel %vm365_vm1, %v557_v22, 0 }
 0x117   : > { %v490_v24 = vpop.permute.xlu0 %489 }
 0x118   : > { %780 = vmatmul.msk.bf16.vlgmr.msra.gmra.mxu3 %vm365_vm1, %v425_v18  ;;  %782 = vmatmul.msk.bf16.vlgmr.msrb.gmra.mxu0 %vm365_vm1, %v490_v24 }
 0x119   : > { %571 = vmatpush.bf16.xpose.msrb.mxu3 %v562_v23 }
 0x128   : > { %784 = vmatmul.msk.bf16.vlgmr.msrb.gmra.mxu3 %vm365_vm1, %v555_v10 }
 0x18d   : > { %v381_v26 = vpop.f32.mrf.mxu1 }
 0x18e   : > { %v382_v27 = vadd.f32 %v824_v25, %v381_v26 }
 0x190   : > { %v385_v28 = vsel %vm365_vm1, %v382_v27, -inf }
 0x191   : > { %386 = vmax.xlane.f32.xlu1 %v385_v28 }
 0x195   : > { %v383_v29 = vpop.f32.mrf.mxu1  ;;  %v508_v30 = vpop.f32.mrf.mxu0 }
 0x196   : > { %v509_v31 = vadd.f32 %v824_v25, %v508_v30 }
 0x198   : > { %v512_v32 = vsel %vm365_vm1, %v509_v31, -inf }
 0x199   : > { %513 = vmax.xlane.f32.xlu1 %v512_v32 }
 0x19b   : > { %v443_v33 = vpop.f32.mrf.mxu3 }
 0x19c   : > { %v444_v34 = vadd.f32 %v824_v25, %v443_v33 }
 0x19d   : > { %v510_v35 = vpop.f32.mrf.mxu0 }
 0x19e   : > { %v447_v36 = vsel %vm365_vm1, %v444_v34, -inf }
 0x19f   : > { %448 = vmax.xlane.f32.xlu0 %v447_v36 }
 0x1a3   : > { %v445_v37 = vpop.f32.mrf.mxu3 }
 0x1ab   : > { %v573_v38 = vpop.f32.mrf.mxu3 }
 0x1ac   : > { %v574_v39 = vadd.f32 %v824_v25, %v573_v38 }
 0x1ae   : > { %v577_v40 = vsel %vm365_vm1, %v574_v39, -inf }
 0x1af   : > { %578 = vmax.xlane.f32.xlu2 %v577_v40  ;;  %v799_v40 = vld [vmem:[%s1021_s4] sm:$0xff] }
 0x1b2   : > { %525 = vrot.lane.b32.xlu1 %v950_v7, %s866_s12 }
 0x1b3   : > { %590 = vrot.lane.b32.xlu0 %v950_v7, %s867_s13  ;;  %v575_v41 = vpop.f32.mrf.mxu3 }
 0x204   : > { %v387_v42 = vpop.xlane.xlu1 %386 }
 0x205   : > { %v388_v43 = vsub.f32 %v382_v27, %v387_v42 }
 0x207   : > { %v389_v44 = vpack.c.bf16 %v388_v43, %v388_v43 }
 0x209   : > { %v390_v45 = vunpack.c.l.bf16 %v389_v44 }
 0x20b   : > { %v391_v46 = vmul.f32 1.442695, %v390_v45 }
 0x20c   : > { %v514_v47 = vpop.xlane.xlu1 %513 }
 0x20d   : > { %829 = vpow2.f32 %v391_v46  ;;  %v515_v48 = vsub.f32 %v509_v31, %v514_v47  ;;  %v826_v46 = vld [vmem:[%s1022_s5] ss:$0 sm:$0xff]  ;;  %v317_v47 = vunpack.c.l.bf16 %v943_v2 }
 0x20f   : > { %v516_v49 = vpack.c.bf16 %v515_v48, %v515_v48 }
 0x211   : > { %v517_v54 = vunpack.c.l.bf16 %v516_v49 }
 0x212   : > { %v449_v50 = vpop.xlane.xlu0 %448 }
 0x213   : > { %v830_v51 = vpop.eup %829  ;;  %v450_v52 = vsub.f32 %v444_v34, %v449_v50  ;;  %v518_v57 = vmul.f32 1.442695, %v517_v54 }
 0x214   : > { %v393_v53 = vpack.c.bf16 %v830_v51, %v830_v51 }
 0x215   : > { %v451_v55 = vpack.c.bf16 %v450_v52, %v450_v52 }
 0x216   : > { %779 = vmatmul.msk.bf16.vlgmr.msra.gmra.mxu2 %vm365_vm1, %v393_v53  ;;  %v394_v15 = vunpack.c.l.bf16 %v393_v53  ;;  %v871_v53 = vmov 32.0  }
 0x217   : > { %v452_v56 = vunpack.c.l.bf16 %v451_v55 }
 0x218   : > { %v395_v18 = vsel %vm365_vm1, %v394_v15, 0.0 }
 0x219   : > { %v453_v58 = vmul.f32 1.442695, %v452_v56 }
 0x21b   : > { %831 = vpow2.f32 %v453_v58 }
 0x21c   : > { %833 = vpow2.f32 %v518_v57 }
 0x221   : > { %v832_v59 = vpop.eup %831 }
 0x222   : > { %v455_v60 = vpack.c.bf16 %v832_v59, %v832_v59  ;;  %v579_v61 = vpop.xlane.xlu2 %578  ;;  %v834_v62 = vpop.eup %833 }
 0x223   : > { %v580_v63 = vsub.f32 %v574_v39, %v579_v61  ;;  %v520_v6 = vpack.c.bf16 %v834_v62, %v834_v62  ;;  %v800_v39 = vld [vmem:[%s1021_s4 + $0x8] sm:$0xff] }
 0x224   : > { %v526_v0 = vpop.permute.xlu1 %525  ;;  %v456_v1 = vunpack.c.l.bf16 %v455_v60  ;;  %650 = vmatpush.bf16.msra.mxu0 %v800_v39 }
 0x225   : > { %v581_v3 = vpack.c.bf16 %v580_v63, %v580_v63  ;;  %v591_v4 = vpop.permute.xlu0 %590  ;;  %v531_v5 = vsel %vm403_vm2, %v526_v0, 0  ;;  %v521_v11 = vunpack.c.l.bf16 %v520_v6 }
 0x226   : > { %v596_v7 = vsel %vm403_vm2, %v591_v4, 0  ;;  %781 = vmatmul.msk.bf16.vlgmr.msrb.gmra.mxu2 %vm365_vm1, %v455_v60  ;;  %540 = vmatpush.bf16.msrb.mxu1 %v531_v5  ;;  %v457_v8 = vsel %vm365_vm1, %v456_v1, 0.0 }
 0x227   : > { %v582_v9 = vunpack.c.l.bf16 %v581_v3  ;;  %458 = vadd.xlane.f32.xlu2 %v457_v8  ;;  %605 = vmatpush.bf16.msra.mxu2 %v596_v7  ;;  %v522_v12 = vsel %vm365_vm1, %v521_v11, 0.0 }
 0x228   : > { %651 = vmatpush.bf16.msra.mxu0 %v799_v40 }
 0x229   : > { %v583_v10 = vmul.f32 1.442695, %v582_v9  ;;  %783 = vmatmul.msk.bf16.vlgmr.msrb.gmra.mxu1 %vm365_vm1, %v520_v6 }
 0x22b   : > { %835 = vpow2.f32 %v583_v10  ;;  %v827_v10 = vld [vmem:[%s1023_s6] ss:$0 sm:$0xff] }
 0x22f   : > { %523 = vadd.xlane.f32.xlu2 %v522_v12  ;;  %v828_v12 = vld [vmem:[%s1024_s7] ss:$0 sm:$0xff] }
 0x231   : > { %v836_v13 = vpop.eup %835 }
 0x232   : > { %v585_v14 = vpack.c.bf16 %v836_v13, %v836_v13 }
 0x234   : > { %v586_v16 = vunpack.c.l.bf16 %v585_v14 }
 0x236   : > { %785 = vmatmul.msk.bf16.vlgmr.msra.gmra.mxu2 %vm365_vm1, %v585_v14  ;;  %v587_v17 = vsel %vm365_vm1, %v586_v16, 0.0 }
 0x237   : > { %588 = vadd.xlane.f32.xlu0 %v587_v17  ;;  %396 = vadd.xlane.f32.xlu2 %v395_v18 }
 0x299   : > { %v416_v19 = vpop.f32.mrf.mxu2 }
 0x29a   : > { %v459_v20 = vpop.xlane.xlu2 %458 }
 0x29b   : > { %837 = vrcp.f32 %v459_v20 }
 0x2a1   : > { %v418_v21 = vpop.f32.mrf.mxu2  ;;  %v838_v24 = vpop.eup %837 }
 0x2a2   : > { %v524_v22 = vpop.xlane.xlu2 %523 }
 0x2a3   : > { %839 = vrcp.f32 %v524_v22 }
 0x2a6   : > { %v542_v23 = vpop.f32.mrf.mxu1 }
 0x2a9   : > { %v840_v25 = vpop.eup %839  ;;  %v477_v26 = vpop.f32.mrf.mxu2 }
 0x2aa   : > { %v547_v27 = vmul.f32 %v840_v25, %v542_v23  ;;  %v482_v28 = vmul.f32 %v838_v24, %v477_v26  ;;  %v397_v29 = vpop.xlane.xlu2 %396  ;;  %v589_v31 = vpop.xlane.xlu0 %588 }
 0x2ab   : > { %841 = vrcp.f32 %v397_v29 }
 0x2ac   : > { %484 = vrot.lane.b32.xlu1 %v482_v28, %s868_s14  ;;  %549 = vrot.lane.b32.xlu2 %v547_v27, %s869_s15  ;;  %843 = vrcp.f32 %v589_v31 }
 0x2ad   : > { %845 = vrcp.f32 %v871_v53 }
 0x2ae   : > { %v544_v30 = vpop.f32.mrf.mxu1 }
 0x2b1   : > { %v479_v32 = vpop.f32.mrf.mxu2  ;;  %v842_v33 = vpop.eup %841 }
 0x2b2   : > { %v421_v34 = vmul.f32 %v842_v33, %v416_v19  ;;  %v844_v35 = vpop.eup %843 }
 0x2b3   : > { %v846_v54 = vpop.eup %845 }
 0x2b4   : > { %422 = vst.msk [vmem:[#allocation2] sm:$0xff] %vm365_vm1, %v421_v34  ;;  %v664_v55 = vmul.f32 32.0, %v846_v54  ;;  %vm668_vm6 = vweird.f32 %v846_v54 }
 0x2b6   : > { %v665_v56 = vsub.f32 1.0, %v664_v55 }
 0x2b8   : > { %v666_v57 = vmul.f32 %v846_v54, %v665_v56 }
 0x2b9   : > { %v607_v36 = vpop.f32.mrf.mxu2 }
 0x2ba   : > { %v612_v37 = vmul.f32 %v844_v35, %v607_v36  ;;  %v667_v58 = vadd.f32 %v846_v54, %v666_v57 }
 0x2bc   : > { %614 = vrot.lane.b32.xlu1 %v612_v37, %s870_s16  ;;  %v669_v59 = vsel %vm668_vm6, %v846_v54, %v667_v58 }
 0x2c1   : > { %v609_v38 = vpop.f32.mrf.mxu2 }
 0x306   : > { %v550_v42 = vpop.permute.xlu2 %549 }
 0x31e   : > { %v485_v41 = vpop.permute.xlu1 %484 }
 0x31f   : > { %488 = vst.msk [vmem:[#allocation2] sm:$0xff] %vm487_vm3, %v485_v41 }
 0x320   : > { %553 = vst.msk [vmem:[#allocation2] sm:$0xff] %vm552_vm4, %v550_v42 }
 0x32e   : > { %v615_v43 = vpop.permute.xlu1 %614 }
 0x32f   : > { %618 = vst.msk [vmem:[#allocation2] sm:$0xff] %vm617_vm5, %v615_v43 }
 0x336   : > { %v619_v44 = vld [vmem:[#allocation2] sm:$0xff] }
 0x337   : > { %v620_v45 = vpack.c.bf16 %v619_v44, %v619_v44 }
 0x339   : > { %794 = vmatmul.msk.bf16.vlgmr.msra.gmra.mxu0 %vm338_vm0, %v620_v45 }
 0x3b6   : > { %v653_v48 = vpop.f32.mrf.mxu0 }
 0x3b7   : > { %v654_v49 = vadd.f32 %v826_v46, %v653_v48 }
 0x3b9   : > { %v657_v50 = vadd.f32 %v654_v49, %v317_v47 }
 0x3bb   : > { %v660_v51 = vsel %vm338_vm0, %v657_v50, 0.0 }
 0x3bc   : > { %661 = vadd.xlane.f32.xlu1 %v660_v51 }
 0x3be   : > { %v655_v52 = vpop.f32.mrf.mxu0 }
 0x42f   : > { %v662_v60 = vpop.xlane.xlu1 %661 }
 0x430   : > { %v670_v61 = vmul.f32 %v669_v59, %v662_v60 }
 0x432   : > { %v671_v62 = vsub.f32 %v657_v50, %v670_v61 }
 0x434   : > { %v672_v2 = vmul.f32 %v671_v62, %v671_v62 }
 0x436   : > { %v673_v63 = vsel %vm338_vm0, %v672_v2, 0.0 }
 0x437   : > { %674 = vadd.xlane.f32.xlu2 %v673_v63 }
 0x4aa   : > { %v675_v0 = vpop.xlane.xlu2 %674 }
 0x4ab   : > { %v676_v1 = vmul.f32 %v675_v0, %v669_v59 }
 0x4ad   : > { %v677_v3 = vadd.f32 1e-05, %v676_v1 }
 0x4af   : > { %847 = vrsqrt.f32 %v677_v3  ;;  %vm684_vm8 = vweird.f32 %v677_v3 }
 0x4b5   : > { %v848_v4 = vpop.eup %847 }
 0x4b6   : > { %v679_v5 = vmul.f32 %v848_v4, %v677_v3  ;;  %vm685_vm7 = vweird.f32 %v848_v4 }
 0x4b7   : > { %vm686_vm9 = vmor %vm684_vm8, %vm685_vm7 }
 0x4b8   : > { %v680_v6 = vmul.f32 %v848_v4, %v679_v5 }
 0x4ba   : > { %v681_v7 = vmul.f32 0.5, %v680_v6 }
 0x4bc   : > { %v682_v8 = vsub.f32 1.5, %v681_v7 }
 0x4be   : > { %v683_v9 = vmul.f32 %v848_v4, %v682_v8 }
 0x4c0   : > { %v687_v11 = vsel %vm686_vm9, %v848_v4, %v683_v9 }
 0x4c1   : > { %v688_v13 = vmul.f32 %v687_v11, %v671_v62 }
 0x4c3   : > { %v692_v14 = vmul.f32 %v827_v10, %v688_v13 }
 0x4c5   : > { %v696_v15 = vadd.f32 %v828_v12, %v692_v14 }
 0x4c7   : > { %v697_v16 = vpack.c.bf16 %v696_v15, %v696_v15 }
 0x4c9   : > { %699 = vst.msk [vmem:[%s314_s9] sm:$0xf] %vm698_vm10, %v697_v16 }
 0x4ca PF: > { %s18_s27 = sadd.s32 1, %s855_s27  }
 0x4cb   : > { %p15_p4 = scmp.ge.s32.totalorder %s18_s27, 4  }
 0x4cd   :  { %17 = sbr.rel (!%p15_p4) target bundleno = 1 (0x1), region = 85 }

// kernel: roberta_classifier_forward.11
= control target key start
LH: loop header
LB: loop body
LE: loop exit
PB: predicated region body
PF: predicated region fallthrough
CT: control target
= control target key end

     0   :  { %vm38_vm0 = vcmask 261120   ;;  %v301_v5 = vmov 8.0   ;;  %s393_s0 = inlined_call_operand.vmem [shape: bf16[2,8,32], index: 0, kind: input, shape index: {}]   ;;  %s394_s1 = inlined_call_operand.vmem [shape: bf16[32,32], index: 1, kind: input, shape index: {}]   ;;  %s395_s2 = inlined_call_operand.vmem [shape: f32[1,32], index: 2, kind: input, shape index: {}]   ;;  %s396_s3 = inlined_call_operand.vmem [shape: bf16[32,16], index: 3, kind: input, shape index: {}]   ;;  %s397_s4 = inlined_call_operand.vmem [shape: f32[1,16], index: 4, kind: input, shape index: {}]   ;;  %s398_s5 = inlined_call_operand.vmem [shape: bf16[16,16], index: 5, kind: input, shape index: {}]   ;;  %s399_s6 = inlined_call_operand.vmem [shape: f32[1,16], index: 6, kind: input, shape index: {}]   ;;  %s400_s7 = inlined_call_operand.vmem [shape: bf16[16,128], index: 7, kind: input, shape index: {}]   ;;  %s401_s8 = inlined_call_operand.vmem [shape: f32[1,128], index: 8, kind: input, shape index: {}]   ;;  %s402_s9 = inlined_call_operand.hbm [shape: f32[2,128], index: 9, kind: output, shape index: {}]  }
   0x1   :  { %v252_v0 = vld [vmem:[%s394_s1 + $0x8] sm:$0xff]  ;;  %v258_v1 = vld [vmem:[%s393_s0] sm:$0xff]   ;;  %267 = vrcp.f32 %v301_v5 }
   0x2   :  { %v251_v2 = vld [vmem:[%s394_s1] sm:$0xff]  ;;  %v259_v3 = vunpack.c.l.bf16 %v258_v1  ;;  %v260_v4 = vunpack.c.h.bf16 %v258_v1  ;;  %100 = vmatpush.bf16.msra.mxu0 %v252_v0 }
   0x3   :  { %14 = vsyncpa [#allocation3], 0  ;;  %vm76_vm2 = vcmask 1041409   ;;  %v254_v34 = vld [vmem:[%s396_s3 + $0x8] sm:$0xff]  ;;  %v253_v35 = vld [vmem:[%s396_s3] sm:$0xff]  ;;  %vm159_vm3 = vcmask 130048  }
   0x4   :  { %v39_v6 = vsel %vm38_vm0, %v259_v3, 0.0  ;;  %v46_v7 = vsel %vm38_vm0, %v260_v4, 0.0  ;;  %138 = vmatpush.bf16.msra.mxu1 %v254_v34  ;;  %v263_v36 = vld [vmem:[%s395_s2] ss:$0 sm:$0xff]  ;;  %s302_s25 = smov [#allocation2]   ;;  %s214_s28 = sshll.u32 %s402_s9, 4  ;;  %s215_s28 = int_to_ptr.hbm [resolvable:$true] %s214_s28 }
   0x5   :  { %v40_v8 = vrot.slane %v39_v6, 4  ;;  %v47_v9 = vrot.slane %v46_v7, 4  ;;  %v255_v42 = vld [vmem:[%s398_s5] sm:$0xff]  ;;  %s212_s26 = sshll.u32 %s302_s25, 4  ;;  %s213_s26 = int_to_ptr.vmem [resolvable:$true] %s212_s26 }
   0x6   :  { %101 = vmatpush.bf16.msra.mxu0 %v251_v2  ;;  %170 = vmatpush.bf16.msra.mxu2 %v255_v42  ;;  %v264_v43 = vld [vmem:[%s397_s4] ss:$0 sm:$0xff] }
   0x7   :  { %v41_v10 = vadd.f32 %v40_v8, %v39_v6  ;;  %v48_v11 = vadd.f32 %v47_v9, %v46_v7  ;;  %v268_v12 = vpop.eup %267  ;;  %v256_v49 = vld [vmem:[%s400_s7] sm:$0xff] }
   0x8   :  { %v54_v15 = vmul.f32 8.0, %v268_v12  ;;  %vm58_vm1 = vweird.f32 %v268_v12  ;;  %139 = vmatpush.bf16.msra.mxu1 %v253_v35  ;;  %200 = vmatpush.bf16.msra.mxu3 %v256_v49  ;;  %v265_v50 = vld [vmem:[%s399_s6] ss:$0 sm:$0xff] }
   0x9   :  { %v42_v13 = vrot.slane %v41_v10, 2  ;;  %v49_v14 = vrot.slane %v48_v11, 2  ;;  %v266_v56 = vld [vmem:[%s401_s8] ss:$0 sm:$0xff] }
   0xa   :  { %v55_v18 = vsub.f32 1.0, %v54_v15 }
   0xb   :  { %v43_v16 = vadd.f32 %v42_v13, %v41_v10  ;;  %v50_v17 = vadd.f32 %v49_v14, %v48_v11 }
   0xc   :  { %v56_v21 = vmul.f32 %v268_v12, %v55_v18 }
   0xd   :  { %v44_v19 = vrot.slane %v43_v16, 1  ;;  %v51_v20 = vrot.slane %v50_v17, 1 }
   0xe   :  { %v57_v24 = vadd.f32 %v268_v12, %v56_v21 }
   0xf   :  { %v45_v22 = vadd.f32 %v44_v19, %v43_v16  ;;  %v52_v23 = vadd.f32 %v51_v20, %v50_v17 }
  0x10   :  { %v59_v25 = vsel %vm58_vm1, %v268_v12, %v57_v24 }
  0x11   :  { %v60_v26 = vmul.f32 %v59_v25, %v45_v22  ;;  %v61_v27 = vmul.f32 %v59_v25, %v52_v23 }
  0x13   :  { %v62_v28 = vpack.c.bf16 %v60_v26, %v60_v26  ;;  %v63_v29 = vpack.c.bf16 %v61_v27, %v61_v27 }
  0x15   :  { %v74_v30 = vunpack.c.l.b16 %v62_v28  ;;  %v75_v31 = vunpack.c.l.b16 %v63_v29 }
  0x17   :  { %v77_v32 = vsel %vm76_vm2, %v75_v31, %v74_v30 }
  0x18   :  { %v78_v33 = vpack.c.b16 %v77_v32, %v77_v32 }
  0x1a   :  { %231 = vmatmul.msk.bf16.vlgmr.msra.gmra.mxu0 %vm38_vm0, %v78_v33 }
  0x97   :  { %v103_v37 = vpop.f32.mrf.mxu0 }
  0x98   :  { %v104_v38 = vadd.f32 %v263_v36, %v103_v37 }
  0x9a   :  { %269 = vtanh.f32 %v104_v38 }
  0x9f   :  { %v105_v39 = vpop.f32.mrf.mxu0 }
  0xa0   :  { %v270_v40 = vpop.eup %269 }
  0xa1   :  { %v108_v41 = vpack.c.bf16 %v270_v40, %v270_v40 }
  0xa3   :  { %240 = vmatmul.msk.bf16.vlgmr.msra.gmra.mxu1 %vm38_vm0, %v108_v41 }
 0x120   :  { %v141_v44 = vpop.f32.mrf.mxu1 }
 0x121   :  { %v142_v45 = vadd.f32 %v264_v43, %v141_v44 }
 0x123   :  { %271 = vtanh.f32 %v142_v45 }
 0x128   :  { %v143_v46 = vpop.f32.mrf.mxu1 }
 0x129   :  { %v272_v47 = vpop.eup %271 }
 0x12a   :  { %v146_v48 = vpack.c.bf16 %v272_v47, %v272_v47 }
 0x12c   :  { %245 = vmatmul.msk.bf16.vlgmr.msra.gmra.mxu2 %vm159_vm3, %v146_v48 }
 0x1af   :  { %v172_v51 = vpop.f32.mrf.mxu2 }
 0x1b0   :  { %v173_v52 = vadd.f32 %v265_v50, %v172_v51 }
 0x1b2   :  { %273 = vtanh.f32 %v173_v52 }
 0x1b7   :  { %v174_v53 = vpop.f32.mrf.mxu2 }
 0x1b8   :  { %v274_v54 = vpop.eup %273 }
 0x1b9   :  { %v177_v55 = vpack.c.bf16 %v274_v54, %v274_v54 }
 0x1bb   :  { %250 = vmatmul.msk.bf16.vlgmr.msra.gmra.mxu3 %vm159_vm3, %v177_v55 }
 0x23e   :  { %v202_v57 = vpop.f32.mrf.mxu3 }
 0x23f   :  { %v203_v58 = vadd.f32 %v266_v56, %v202_v57 }
 0x241   :  { %206 = vst [vmem:[#allocation2] sm:$0x3] %v203_v58 }
 0x242   :  { %217 = dma.vmem_to_hbm [thread:$0]  %s213_s26, 32, %s215_s28, [#allocation3]  }
 0x246   :  { %v204_v59 = vpop.f32.mrf.mxu3 }
 0x247   :  { %299 = dma.done.wait [#allocation3], 32  }
 0x248   :  { %300 = vsyncadd [#allocation3], 4294967264 }
 0x249   :  { %222 = vsyncpa [#allocation3], 1 }

</bundles_post_ra>
